<compile_context>
chip_gen: v5e
topology: v5e:2x2
jax: 0.10.0
libtpu: 0.0.40
codegen_flags: <defaults>
</compile_context>

<pallas_src>
import functools

import jax
import jax.numpy as jnp
from jax import lax
from jax.experimental import pallas as pl
from jax.experimental.pallas import tpu as pltpu


def _mixpool_kernel(x_ref, mp_ref, pc_ref,
                    wa_ref, sa_ref, ba_ref, wf2_ref, bf2_ref,
                    wc1_ref, sc1_ref, bc1_ref,
                    out_ref, *, H, W, out_c, coh):
    """Fused MixPool forward for one group of batch images.

    x_ref  : (Cin, Pblk)         bf16 -- channel-first, pixels (batch-folded) on lanes
    mp_ref : (1, Pblk)           f32  -- MaxPool2d(m), pooled in the wrapper
    pc_ref : (2, Pblk)           i32  -- [pixel-index-in-image, column-in-image]
    wa_ref : (out_c+coh, 9*Cin)  bf16 -- [fmask conv3x3 | conv2] weights, im2col-flat
    sa/ba  : (out_c+coh, 1)      f32  -- folded BN scale / bias for the fused GEMM
    wf2    : (out_c, 1), bf2: (1, 1)  -- fmask 1x1 projection (f32, VPU path)
    wc1    : (coh, 9*Cin) bf16, sc1/bc1: (coh, 1) f32 -- conv1 (+ folded BN)
    out_ref: (2*coh, Pblk)       f32  -- [conv1 | conv2] channels, pixels on lanes
    """
    x = x_ref[...]                           # (Cin, Pblk)
    pin = pc_ref[0:1, :]                     # pixel index within its image
    col = pc_ref[1:2, :]                     # column within its image

    # per-image boundary predicates, hoisted (each is reused by 3 of the 9 taps)
    row_ok = {0: pin >= W, 1: None, 2: pin < (H - 1) * W}
    col_ok = {0: col >= 1, 1: None, 2: col <= W - 2}

    def roll_lanes(arr, s):
        # value at flat pixel p+s for every output pixel p (lane-axis rotation, XLU)
        return jnp.roll(arr, -s, axis=-1) if s != 0 else arr

    def shifted_x(dy, dx):
        # x at input pixel (y+dy-1, x+dx-1) for every output pixel, zero where that
        # pixel falls outside the image (== the conv's zero padding).
        out = roll_lanes(x, (dy - 1) * W + (dx - 1))
        r, c = row_ok[dy], col_ok[dx]
        ok = r if c is None else (c if r is None else (r & c))
        if ok is not None:
            out = jnp.where(ok, out, jnp.zeros_like(out))
        return out

    # ---- im2col (transposed): contraction axis K = 9*Cin, pixels stay on lanes.
    taps = [shifted_x(dy, dx) for dy in range(3) for dx in range(3)]
    patches = jnp.concatenate(taps, axis=0)                        # (9*Cin, Pblk)

    # ---- one fat GEMM for fmask-conv3x3 + conv2 (weights fused on the out axis),
    #      folded-BN scale/bias + ReLU epilogue in f32.
    acc = jnp.dot(wa_ref[...], patches, preferred_element_type=jnp.float32)
    pre = acc * sa_ref[...] + ba_ref[...]                          # (out_c+coh, Pblk)
    h1 = jnp.maximum(pre[:out_c, :], 0.0)                          # fmask hidden
    y2 = jnp.maximum(pre[out_c:, :], 0.0)                          # conv2 branch

    # ---- fmask 1x1 conv on the VPU + sublane reduce; sigmoid(t) > 0.5 <=> t > 0
    logits = jnp.sum(h1 * wf2_ref[...], axis=0, keepdims=True) + bf2_ref[...]
    fmask = logits > 0.0                                           # (1, Pblk)

    # ---- logical_or(fmask, maxpool(m)) as a {0,1} per-pixel mask
    mask = jnp.logical_or(fmask, mp_ref[...] != 0.0).astype(x.dtype)

    # ---- conv1 on the masked input: each tap times the identically rolled mask.
    #      No boundary re-masking of the rolled mask is needed: the x-taps are
    #      already zero at out-of-image positions, so wrapped mask garbage there
    #      is multiplied by zero.
    mtaps = [taps[dy * 3 + dx] * roll_lanes(mask, (dy - 1) * W + (dx - 1))
             for dy in range(3) for dx in range(3)]
    mpatches = jnp.concatenate(mtaps, axis=0)                      # (9*Cin, Pblk)
    acc1 = jnp.dot(wc1_ref[...], mpatches, preferred_element_type=jnp.float32)
    y1 = jnp.maximum(acc1 * sc1_ref[...] + bc1_ref[...], 0.0)      # conv1 branch

    # ---- channel concat (torch.cat dim=1) is a sublane-axis concat here; the
    #      store is a single full-tile, lane-dense write.
    out_ref[...] = jnp.concatenate([y1, y2], axis=0).astype(out_ref.dtype)


def _flatten_conv3x3(w):
    # (cout, cin, 3, 3) -> (cout, 9*cin); column index = (ky*3+kx)*cin + ci,
    # matching the kernel's tap-major / channel-minor im2col row ordering.
    cout, cin = w.shape[:2]
    return jnp.transpose(w.reshape(cout, cin, 9), (0, 2, 1)).reshape(cout, 9 * cin)


def _fold_bn(conv, bn, eps=1e-5):
    # eval-mode BatchNorm + conv bias folded into: y = scale * conv_acc + bias
    scale = bn["gamma"] / jnp.sqrt(bn["var"] + eps)
    bias = scale * (conv["b"] - bn["mean"]) + bn["beta"]
    return scale.astype(jnp.float32), bias.astype(jnp.float32)


def mixpool_forward(x, m, params, *, compute_dtype=jnp.bfloat16, batch_block=None):
    """MixPool forward. x: (N, Cin, H, W), m: (N, 1, kh*H, kw*W) -> (N, 2*(out_c//2), H, W)."""
    N, Cin, H, W = x.shape
    _, _, MH, MW = m.shape
    assert MH % H == 0 and MW % W == 0, "m spatial dims must be multiples of x's"
    kh, kw = MH // H, MW // W
    P = H * W

    out_c = params["fmask_conv"]["w"].shape[0]
    coh = params["conv1"]["w"].shape[0]

    # ---- fold BN + bias, fuse fmask-conv3x3 and conv2 along the output axis.
    sf1, bf1 = _fold_bn(params["fmask_conv"], params["fmask_bn"])
    sc1, bc1 = _fold_bn(params["conv1"], params["bn1"])
    sc2, bc2 = _fold_bn(params["conv2"], params["bn2"])
    wa = jnp.concatenate([_flatten_conv3x3(params["fmask_conv"]["w"]),
                          _flatten_conv3x3(params["conv2"]["w"])], axis=0)
    wc1 = _flatten_conv3x3(params["conv1"]["w"])
    sa = jnp.concatenate([sf1, sc2])[:, None]
    ba = jnp.concatenate([bf1, bc2])[:, None]
    wf2 = params["fmask_proj"]["w"].reshape(out_c, 1).astype(jnp.float32)
    bf2 = params["fmask_proj"]["b"].reshape(1, 1).astype(jnp.float32)

    # ---- batch folding: fatter GEMMs per grid step, while keeping >=2 "parallel"
    #      steps so both v7x TensorCores get work (harmless on 1-TC v5e/v6e).
    if batch_block is None:
        batch_block = N // 2 if (N >= 2 and N % 2 == 0) else 1
    assert N % batch_block == 0
    G = N // batch_block
    Pblk = batch_block * P

    # ---- layout glue (XLA): NCHW is already channel-major, so the lane-dense
    #      (channels, pixels) layout is just reshapes; MaxPool2d(m) is done here
    #      instead of an in-kernel cross-lane reduce of a padded tap tensor.
    xg = (x.reshape(G, batch_block, Cin, P).transpose(0, 2, 1, 3)
           .reshape(G, Cin, Pblk).astype(compute_dtype))
    mp = m.reshape(N, 1, H, kh, W, kw).max(axis=(3, 5)).reshape(N, 1, P)
    mpg = (mp.reshape(G, batch_block, 1, P).transpose(0, 2, 1, 3)
             .reshape(G, 1, Pblk).astype(jnp.float32))
    pixel = jnp.arange(Pblk, dtype=jnp.int32)
    pincol = jnp.stack([pixel % P, pixel % W]).astype(jnp.int32)   # (2, Pblk)

    kernel = functools.partial(_mixpool_kernel, H=H, W=W, out_c=out_c, coh=coh)

    # NOTE: for large H*W, tile the pixel (lane) axis with a 1-row halo and set
    # pltpu.CompilerParams(vmem_limit_bytes=...) (v7x has only 64 MiB VMEM);
    # whole-image blocks are well within VMEM at these sizes.
    out = pl.pallas_call(
        kernel,
        out_shape=jax.ShapeDtypeStruct((G, 2 * coh, Pblk), jnp.float32),
        grid=(G,),
        in_specs=[
            pl.BlockSpec((None, Cin, Pblk), lambda g: (g, 0, 0)),
            pl.BlockSpec((None, 1, Pblk), lambda g: (g, 0, 0)),
            pl.BlockSpec((2, Pblk), lambda g: (0, 0)),
            pl.BlockSpec(wa.shape, lambda g: (0, 0)),
            pl.BlockSpec(sa.shape, lambda g: (0, 0)),
            pl.BlockSpec(ba.shape, lambda g: (0, 0)),
            pl.BlockSpec(wf2.shape, lambda g: (0, 0)),
            pl.BlockSpec(bf2.shape, lambda g: (0, 0)),
            pl.BlockSpec(wc1.shape, lambda g: (0, 0)),
            pl.BlockSpec((coh, 1), lambda g: (0, 0)),
            pl.BlockSpec((coh, 1), lambda g: (0, 0)),
        ],
        out_specs=pl.BlockSpec((None, 2 * coh, Pblk), lambda g: (g, 0, 0)),
        compiler_params=pltpu.CompilerParams(dimension_semantics=("parallel",)),
    )(xg, mpg, pincol,
      wa.astype(compute_dtype), sa, ba, wf2, bf2,
      wc1.astype(compute_dtype), sc1[:, None], bc1[:, None])

    # ---- layout glue back to NCHW
    out = (out.reshape(G, 2 * coh, batch_block, P).transpose(0, 2, 1, 3)
              .reshape(N, 2 * coh, H, W))
    return out


# ----------------------------- reference + test ------------------------------

def init_mixpool_params(key, in_c, out_c):
    coh = out_c // 2
    ks = jax.random.split(key, 8)

    def conv(k, co, ci, ksz):
        kw_, kb_ = jax.random.split(k)
        w = jax.random.normal(kw_, (co, ci, ksz, ksz), jnp.float32) / jnp.sqrt(ci * ksz * ksz)
        b = 0.1 * jax.random.normal(kb_, (co,), jnp.float32)
        return {"w": w, "b": b}

    def bn(k, c):
        kg, kb_, km_, kv_ = jax.random.split(k, 4)
        return {"gamma": 1.0 + 0.1 * jax.random.normal(kg, (c,), jnp.float32),
                "beta": 0.1 * jax.random.normal(kb_, (c,), jnp.float32),
                "mean": 0.05 * jax.random.normal(km_, (c,), jnp.float32),
                "var": 0.5 + jnp.abs(jax.random.normal(kv_, (c,), jnp.float32))}

    return {
        "fmask_conv": conv(ks[0], out_c, in_c, 3),
        "fmask_bn": bn(ks[1], out_c),
        "fmask_proj": {"w": 0.5 * jax.random.normal(ks[2], (1, out_c, 1, 1), jnp.float32),
                       "b": 0.05 * jax.random.normal(ks[3], (1,), jnp.float32)},
        "conv1": conv(ks[4], coh, in_c, 3),
        "bn1": bn(ks[5], coh),
        "conv2": conv(ks[6], coh, in_c, 3),
        "bn2": bn(ks[7], coh),
    }


def mixpool_reference(x, m, params, *, compute_dtype=jnp.bfloat16):
    """Pure-JAX eval-mode reference of the PyTorch MixPool forward (NCHW), using the
    same bf16 quantization of x / 3x3 weights as the kernel (f32 accumulation)."""
    q = lambda a: a.astype(compute_dtype).astype(jnp.float32)

    def conv3x3(inp, p):
        y = lax.conv_general_dilated(q(inp), q(p["w"]), (1, 1), "SAME",
                                     dimension_numbers=("NCHW", "OIHW", "NCHW"),
                                     precision=lax.Precision.HIGHEST)
        return y + p["b"][None, :, None, None]

    def bn(v, p, eps=1e-5):
        return (p["gamma"][None, :, None, None]
                * (v - p["mean"][None, :, None, None])
                / jnp.sqrt(p["var"][None, :, None, None] + eps)
                + p["beta"][None, :, None, None])

    relu = lambda v: jnp.maximum(v, 0.0)

    h = relu(bn(conv3x3(x, params["fmask_conv"]), params["fmask_bn"]))
    w2 = params["fmask_proj"]["w"].reshape(1, -1)
    logits = (jnp.einsum("nchw,oc->nohw", h, w2, precision=lax.Precision.HIGHEST)
              + params["fmask_proj"]["b"][None, :, None, None])
    fmask = (jax.nn.sigmoid(logits) > 0.5).astype(jnp.float32)

    N, _, MH, MW = m.shape
    H, W = x.shape[2], x.shape[3]
    mpool = m.reshape(N, 1, H, MH // H, W, MW // W).max(axis=(3, 5))

    x1 = q(x) * jnp.logical_or(fmask, mpool).astype(jnp.float32)
    y1 = relu(bn(conv3x3(x1, params["conv1"]), params["bn1"]))
    y2 = relu(bn(conv3x3(x, params["conv2"]), params["bn2"]))
    return jnp.concatenate([y1, y2], axis=1)


if __name__ == "__main__":
    key = jax.random.PRNGKey(0)
    N, in_c, out_c, H, W = 2, 4, 8, 16, 16
    MH, MW = 32, 32                            # m has 2x the spatial resolution of x
    kx, km, kp = jax.random.split(key, 3)

    x = jax.random.normal(kx, (N, in_c, H, W), jnp.float32)
    m = (jax.random.uniform(km, (N, 1, MH, MW)) > 0.5).astype(jnp.float32)
    params = init_mixpool_params(kp, in_c, out_c)

    out = jax.jit(mixpool_forward)(x, m, params)
    jax.block_until_ready(out)
    assert out.shape == (N, out_c, H, W), out.shape

    ref = mixpool_reference(x, m, params)
    err = float(jnp.max(jnp.abs(out - ref)))
    assert err < 1e-2, f"max abs error vs reference: {err}"
    print("KERNEL_OK")
</pallas_src>

<mosaic_0001>
module attributes {stable_mosaic.version = 11 : i64} {
  func.func @_mixpool_kernel(%arg0: i32, %arg1: memref<1x4x256xbf16, #tpu.memory_space<vmem>>, %arg2: memref<1x1x256xf32, #tpu.memory_space<vmem>>, %arg3: memref<2x256xi32, #tpu.memory_space<vmem>>, %arg4: memref<12x36xbf16, #tpu.memory_space<vmem>>, %arg5: memref<12x1xf32, #tpu.memory_space<vmem>>, %arg6: memref<12x1xf32, #tpu.memory_space<vmem>>, %arg7: memref<8x1xf32, #tpu.memory_space<vmem>>, %arg8: memref<1x1xf32, #tpu.memory_space<vmem>>, %arg9: memref<4x36xbf16, #tpu.memory_space<vmem>>, %arg10: memref<4x1xf32, #tpu.memory_space<vmem>>, %arg11: memref<4x1xf32, #tpu.memory_space<vmem>>, %arg12: memref<1x8x256xf32, #tpu.memory_space<vmem>>) attributes {dimension_semantics = [#tpu.dimension_semantics<parallel>], iteration_bounds = array<i64: 2>, scalar_prefetch = 0 : i64, scratch_operands = 0 : i64, tpu.core_type = #tpu.core_type<tc>, window_params = [{transform_indices = @transform_0, window_bounds = array<i64: 1, 4, 256>}, {transform_indices = @transform_1, window_bounds = array<i64: 1, 1, 256>}, {pipeline_mode = #tpu.pipeline_mode<synchronous>, transform_indices = @transform_2, window_bounds = array<i64: 2, 256>}, {pipeline_mode = #tpu.pipeline_mode<synchronous>, transform_indices = @transform_3, window_bounds = array<i64: 12, 36>}, {pipeline_mode = #tpu.pipeline_mode<synchronous>, transform_indices = @transform_4, window_bounds = array<i64: 12, 1>}, {pipeline_mode = #tpu.pipeline_mode<synchronous>, transform_indices = @transform_5, window_bounds = array<i64: 12, 1>}, {pipeline_mode = #tpu.pipeline_mode<synchronous>, transform_indices = @transform_6, window_bounds = array<i64: 8, 1>}, {pipeline_mode = #tpu.pipeline_mode<synchronous>, transform_indices = @transform_7, window_bounds = array<i64: 1, 1>}, {pipeline_mode = #tpu.pipeline_mode<synchronous>, transform_indices = @transform_8, window_bounds = array<i64: 4, 36>}, {pipeline_mode = #tpu.pipeline_mode<synchronous>, transform_indices = @transform_9, window_bounds = array<i64: 4, 1>}, {pipeline_mode = #tpu.pipeline_mode<synchronous>, transform_indices = @transform_10, window_bounds = array<i64: 4, 1>}, {transform_indices = @transform_11, window_bounds = array<i64: 1, 8, 256>}]} {
    %c0 = arith.constant 0 : index
    %c0_0 = arith.constant 0 : index
    %c0_1 = arith.constant 0 : index
    %0 = vector.load %arg1[%c0, %c0_0, %c0_1] : memref<1x4x256xbf16, #tpu.memory_space<vmem>>, vector<1x4x256xbf16>
    %1 = vector.shape_cast %0 : vector<1x4x256xbf16> to vector<4x256xbf16>
    %c0_2 = arith.constant 0 : index
    %c0_3 = arith.constant 0 : index
    %2 = vector.load %arg3[%c0_2, %c0_3] : memref<2x256xi32, #tpu.memory_space<vmem>>, vector<1x256xi32>
    %c1 = arith.constant 1 : index
    %c0_4 = arith.constant 0 : index
    %3 = vector.load %arg3[%c1, %c0_4] : memref<2x256xi32, #tpu.memory_space<vmem>>, vector<1x256xi32>
    %c16_i32 = arith.constant 16 : i32
    %4 = vector.broadcast %c16_i32 : i32 to vector<1x256xi32>
    %5 = arith.cmpi sge, %2, %4 : vector<1x256xi32>
    %c240_i32 = arith.constant 240 : i32
    %6 = vector.broadcast %c240_i32 : i32 to vector<1x256xi32>
    %7 = arith.cmpi slt, %2, %6 : vector<1x256xi32>
    %c1_i32 = arith.constant 1 : i32
    %8 = vector.broadcast %c1_i32 : i32 to vector<1x256xi32>
    %9 = arith.cmpi sge, %3, %8 : vector<1x256xi32>
    %c14_i32 = arith.constant 14 : i32
    %10 = vector.broadcast %c14_i32 : i32 to vector<1x256xi32>
    %11 = arith.cmpi sle, %3, %10 : vector<1x256xi32>
    %12 = vector.extract_strided_slice %1 {offsets = [0, 239], sizes = [4, 17], strides = [1, 1]} : vector<4x256xbf16> to vector<4x17xbf16>
    %13 = vector.extract_strided_slice %1 {offsets = [0, 0], sizes = [4, 239], strides = [1, 1]} : vector<4x256xbf16> to vector<4x239xbf16>
    %14 = tpu.concatenate %12, %13 in 1 : vector<4x17xbf16>, vector<4x239xbf16> -> vector<4x256xbf16>
    %15 = arith.andi %5, %9 : vector<1x256xi1>
    %cst = arith.constant 0.000000e+00 : bf16
    %16 = vector.broadcast %cst : bf16 to vector<4x256xbf16>
    %17 = vector.shape_cast %15 : vector<1x256xi1> to vector<1x256xi1>
    %18 = vector.broadcast %17 : vector<1x256xi1> to vector<4x256xi1>
    %19 = arith.select %18, %14, %16 : vector<4x256xi1>, vector<4x256xbf16>
    %20 = vector.extract_strided_slice %1 {offsets = [0, 240], sizes = [4, 16], strides = [1, 1]} : vector<4x256xbf16> to vector<4x16xbf16>
    %21 = vector.extract_strided_slice %1 {offsets = [0, 0], sizes = [4, 240], strides = [1, 1]} : vector<4x256xbf16> to vector<4x240xbf16>
    %22 = tpu.concatenate %20, %21 in 1 : vector<4x16xbf16>, vector<4x240xbf16> -> vector<4x256xbf16>
    %cst_5 = arith.constant 0.000000e+00 : bf16
    %23 = vector.broadcast %cst_5 : bf16 to vector<4x256xbf16>
    %24 = vector.shape_cast %5 : vector<1x256xi1> to vector<1x256xi1>
    %25 = vector.broadcast %24 : vector<1x256xi1> to vector<4x256xi1>
    %26 = arith.select %25, %22, %23 : vector<4x256xi1>, vector<4x256xbf16>
    %27 = vector.extract_strided_slice %1 {offsets = [0, 241], sizes = [4, 15], strides = [1, 1]} : vector<4x256xbf16> to vector<4x15xbf16>
    %28 = vector.extract_strided_slice %1 {offsets = [0, 0], sizes = [4, 241], strides = [1, 1]} : vector<4x256xbf16> to vector<4x241xbf16>
    %29 = tpu.concatenate %27, %28 in 1 : vector<4x15xbf16>, vector<4x241xbf16> -> vector<4x256xbf16>
    %30 = arith.andi %5, %11 : vector<1x256xi1>
    %cst_6 = arith.constant 0.000000e+00 : bf16
    %31 = vector.broadcast %cst_6 : bf16 to vector<4x256xbf16>
    %32 = vector.shape_cast %30 : vector<1x256xi1> to vector<1x256xi1>
    %33 = vector.broadcast %32 : vector<1x256xi1> to vector<4x256xi1>
    %34 = arith.select %33, %29, %31 : vector<4x256xi1>, vector<4x256xbf16>
    %35 = vector.extract_strided_slice %1 {offsets = [0, 255], sizes = [4, 1], strides = [1, 1]} : vector<4x256xbf16> to vector<4x1xbf16>
    %36 = vector.extract_strided_slice %1 {offsets = [0, 0], sizes = [4, 255], strides = [1, 1]} : vector<4x256xbf16> to vector<4x255xbf16>
    %37 = tpu.concatenate %35, %36 in 1 : vector<4x1xbf16>, vector<4x255xbf16> -> vector<4x256xbf16>
    %cst_7 = arith.constant 0.000000e+00 : bf16
    %38 = vector.broadcast %cst_7 : bf16 to vector<4x256xbf16>
    %39 = vector.shape_cast %9 : vector<1x256xi1> to vector<1x256xi1>
    %40 = vector.broadcast %39 : vector<1x256xi1> to vector<4x256xi1>
    %41 = arith.select %40, %37, %38 : vector<4x256xi1>, vector<4x256xbf16>
    %42 = vector.extract_strided_slice %1 {offsets = [0, 1], sizes = [4, 255], strides = [1, 1]} : vector<4x256xbf16> to vector<4x255xbf16>
    %43 = vector.extract_strided_slice %1 {offsets = [0, 0], sizes = [4, 1], strides = [1, 1]} : vector<4x256xbf16> to vector<4x1xbf16>
    %44 = tpu.concatenate %42, %43 in 1 : vector<4x255xbf16>, vector<4x1xbf16> -> vector<4x256xbf16>
    %cst_8 = arith.constant 0.000000e+00 : bf16
    %45 = vector.broadcast %cst_8 : bf16 to vector<4x256xbf16>
    %46 = vector.shape_cast %11 : vector<1x256xi1> to vector<1x256xi1>
    %47 = vector.broadcast %46 : vector<1x256xi1> to vector<4x256xi1>
    %48 = arith.select %47, %44, %45 : vector<4x256xi1>, vector<4x256xbf16>
    %49 = vector.extract_strided_slice %1 {offsets = [0, 15], sizes = [4, 241], strides = [1, 1]} : vector<4x256xbf16> to vector<4x241xbf16>
    %50 = vector.extract_strided_slice %1 {offsets = [0, 0], sizes = [4, 15], strides = [1, 1]} : vector<4x256xbf16> to vector<4x15xbf16>
    %51 = tpu.concatenate %49, %50 in 1 : vector<4x241xbf16>, vector<4x15xbf16> -> vector<4x256xbf16>
    %52 = arith.andi %7, %9 : vector<1x256xi1>
    %cst_9 = arith.constant 0.000000e+00 : bf16
    %53 = vector.broadcast %cst_9 : bf16 to vector<4x256xbf16>
    %54 = vector.shape_cast %52 : vector<1x256xi1> to vector<1x256xi1>
    %55 = vector.broadcast %54 : vector<1x256xi1> to vector<4x256xi1>
    %56 = arith.select %55, %51, %53 : vector<4x256xi1>, vector<4x256xbf16>
    %57 = vector.extract_strided_slice %1 {offsets = [0, 16], sizes = [4, 240], strides = [1, 1]} : vector<4x256xbf16> to vector<4x240xbf16>
    %58 = vector.extract_strided_slice %1 {offsets = [0, 0], sizes = [4, 16], strides = [1, 1]} : vector<4x256xbf16> to vector<4x16xbf16>
    %59 = tpu.concatenate %57, %58 in 1 : vector<4x240xbf16>, vector<4x16xbf16> -> vector<4x256xbf16>
    %cst_10 = arith.constant 0.000000e+00 : bf16
    %60 = vector.broadcast %cst_10 : bf16 to vector<4x256xbf16>
    %61 = vector.shape_cast %7 : vector<1x256xi1> to vector<1x256xi1>
    %62 = vector.broadcast %61 : vector<1x256xi1> to vector<4x256xi1>
    %63 = arith.select %62, %59, %60 : vector<4x256xi1>, vector<4x256xbf16>
    %64 = vector.extract_strided_slice %1 {offsets = [0, 17], sizes = [4, 239], strides = [1, 1]} : vector<4x256xbf16> to vector<4x239xbf16>
    %65 = vector.extract_strided_slice %1 {offsets = [0, 0], sizes = [4, 17], strides = [1, 1]} : vector<4x256xbf16> to vector<4x17xbf16>
    %66 = tpu.concatenate %64, %65 in 1 : vector<4x239xbf16>, vector<4x17xbf16> -> vector<4x256xbf16>
    %67 = arith.andi %7, %11 : vector<1x256xi1>
    %cst_11 = arith.constant 0.000000e+00 : bf16
    %68 = vector.broadcast %cst_11 : bf16 to vector<4x256xbf16>
    %69 = vector.shape_cast %67 : vector<1x256xi1> to vector<1x256xi1>
    %70 = vector.broadcast %69 : vector<1x256xi1> to vector<4x256xi1>
    %71 = arith.select %70, %66, %68 : vector<4x256xi1>, vector<4x256xbf16>
    %72 = tpu.concatenate %19, %26, %34, %41, %1, %48, %56, %63, %71 in 0 : vector<4x256xbf16>, vector<4x256xbf16>, vector<4x256xbf16>, vector<4x256xbf16>, vector<4x256xbf16>, vector<4x256xbf16>, vector<4x256xbf16>, vector<4x256xbf16>, vector<4x256xbf16> -> vector<36x256xbf16>
    %c0_12 = arith.constant 0 : index
    %c0_13 = arith.constant 0 : index
    %73 = vector.load %arg4[%c0_12, %c0_13] : memref<12x36xbf16, #tpu.memory_space<vmem>>, vector<12x36xbf16>
    %cst_14 = arith.constant dense<0.000000e+00> : vector<12x256xf32>
    %74 = tpu.matmul %73, %72, %cst_14 {dimension_numbers = #tpu.dot_dimension_numbers<[1], [0], [0], [1], [0, 0, 1, 1], [], []>} : vector<12x36xbf16>, vector<36x256xbf16>, vector<12x256xf32> -> vector<12x256xf32>
    %c0_15 = arith.constant 0 : index
    %c0_16 = arith.constant 0 : index
    %75 = vector.load %arg5[%c0_15, %c0_16] : memref<12x1xf32, #tpu.memory_space<vmem>>, vector<12x1xf32>
    %76 = vector.broadcast %75 : vector<12x1xf32> to vector<12x256xf32>
    %77 = arith.mulf %74, %76 : vector<12x256xf32>
    %c0_17 = arith.constant 0 : index
    %c0_18 = arith.constant 0 : index
    %78 = vector.load %arg6[%c0_17, %c0_18] : memref<12x1xf32, #tpu.memory_space<vmem>>, vector<12x1xf32>
    %79 = vector.broadcast %78 : vector<12x1xf32> to vector<12x256xf32>
    %80 = arith.addf %77, %79 : vector<12x256xf32>
    %81 = vector.extract_strided_slice %80 {offsets = [0, 0], sizes = [8, 256], strides = [1, 1]} : vector<12x256xf32> to vector<8x256xf32>
    %cst_19 = arith.constant 0.000000e+00 : f32
    %82 = vector.broadcast %cst_19 : f32 to vector<8x256xf32>
    %83 = arith.maximumf %81, %82 : vector<8x256xf32>
    %84 = vector.extract_strided_slice %80 {offsets = [8, 0], sizes = [4, 256], strides = [1, 1]} : vector<12x256xf32> to vector<4x256xf32>
    %cst_20 = arith.constant 0.000000e+00 : f32
    %85 = vector.broadcast %cst_20 : f32 to vector<4x256xf32>
    %86 = arith.maximumf %84, %85 : vector<4x256xf32>
    %c0_21 = arith.constant 0 : index
    %c0_22 = arith.constant 0 : index
    %87 = vector.load %arg7[%c0_21, %c0_22] : memref<8x1xf32, #tpu.memory_space<vmem>>, vector<8x1xf32>
    %88 = vector.broadcast %87 : vector<8x1xf32> to vector<8x256xf32>
    %89 = arith.mulf %83, %88 : vector<8x256xf32>
    %cst_23 = arith.constant dense<0.000000e+00> : vector<256xf32>
    %90 = vector.multi_reduction <add>, %89, %cst_23 [0] : vector<8x256xf32> to vector<256xf32>
    %91 = vector.shape_cast %90 : vector<256xf32> to vector<1x256xf32>
    %c0_24 = arith.constant 0 : index
    %c0_25 = arith.constant 0 : index
    %92 = vector.load %arg8[%c0_24, %c0_25] : memref<1x1xf32, #tpu.memory_space<vmem>>, vector<1x1xf32>
    %93 = vector.broadcast %92 : vector<1x1xf32> to vector<1x256xf32>
    %94 = arith.addf %91, %93 : vector<1x256xf32>
    %cst_26 = arith.constant 0.000000e+00 : f32
    %95 = vector.broadcast %cst_26 : f32 to vector<1x256xf32>
    %96 = arith.cmpf ogt, %94, %95 : vector<1x256xf32>
    %c0_27 = arith.constant 0 : index
    %c0_28 = arith.constant 0 : index
    %c0_29 = arith.constant 0 : index
    %97 = vector.load %arg2[%c0_27, %c0_28, %c0_29] : memref<1x1x256xf32, #tpu.memory_space<vmem>>, vector<1x1x256xf32>
    %98 = vector.shape_cast %97 : vector<1x1x256xf32> to vector<1x256xf32>
    %cst_30 = arith.constant 0.000000e+00 : f32
    %99 = vector.broadcast %cst_30 : f32 to vector<1x256xf32>
    %100 = arith.cmpf one, %98, %99 : vector<1x256xf32>
    %101 = arith.ori %96, %100 : vector<1x256xi1>
    %102 = arith.extui %101 : vector<1x256xi1> to vector<1x256xi32>
    %103 = arith.sitofp %102 : vector<1x256xi32> to vector<1x256xf32>
    %104 = arith.truncf %103 : vector<1x256xf32> to vector<1x256xbf16>
    %105 = vector.extract_strided_slice %104 {offsets = [0, 239], sizes = [1, 17], strides = [1, 1]} : vector<1x256xbf16> to vector<1x17xbf16>
    %106 = vector.extract_strided_slice %104 {offsets = [0, 0], sizes = [1, 239], strides = [1, 1]} : vector<1x256xbf16> to vector<1x239xbf16>
    %107 = tpu.concatenate %105, %106 in 1 : vector<1x17xbf16>, vector<1x239xbf16> -> vector<1x256xbf16>
    %108 = vector.broadcast %107 : vector<1x256xbf16> to vector<4x256xbf16>
    %109 = arith.mulf %19, %108 : vector<4x256xbf16>
    %110 = vector.extract_strided_slice %104 {offsets = [0, 240], sizes = [1, 16], strides = [1, 1]} : vector<1x256xbf16> to vector<1x16xbf16>
    %111 = vector.extract_strided_slice %104 {offsets = [0, 0], sizes = [1, 240], strides = [1, 1]} : vector<1x256xbf16> to vector<1x240xbf16>
    %112 = tpu.concatenate %110, %111 in 1 : vector<1x16xbf16>, vector<1x240xbf16> -> vector<1x256xbf16>
    %113 = vector.broadcast %112 : vector<1x256xbf16> to vector<4x256xbf16>
    %114 = arith.mulf %26, %113 : vector<4x256xbf16>
    %115 = vector.extract_strided_slice %104 {offsets = [0, 241], sizes = [1, 15], strides = [1, 1]} : vector<1x256xbf16> to vector<1x15xbf16>
    %116 = vector.extract_strided_slice %104 {offsets = [0, 0], sizes = [1, 241], strides = [1, 1]} : vector<1x256xbf16> to vector<1x241xbf16>
    %117 = tpu.concatenate %115, %116 in 1 : vector<1x15xbf16>, vector<1x241xbf16> -> vector<1x256xbf16>
    %118 = vector.broadcast %117 : vector<1x256xbf16> to vector<4x256xbf16>
    %119 = arith.mulf %34, %118 : vector<4x256xbf16>
    %120 = vector.extract_strided_slice %104 {offsets = [0, 255], sizes = [1, 1], strides = [1, 1]} : vector<1x256xbf16> to vector<1x1xbf16>
    %121 = vector.extract_strided_slice %104 {offsets = [0, 0], sizes = [1, 255], strides = [1, 1]} : vector<1x256xbf16> to vector<1x255xbf16>
    %122 = tpu.concatenate %120, %121 in 1 : vector<1x1xbf16>, vector<1x255xbf16> -> vector<1x256xbf16>
    %123 = vector.broadcast %122 : vector<1x256xbf16> to vector<4x256xbf16>
    %124 = arith.mulf %41, %123 : vector<4x256xbf16>
    %125 = vector.broadcast %104 : vector<1x256xbf16> to vector<4x256xbf16>
    %126 = arith.mulf %1, %125 : vector<4x256xbf16>
    %127 = vector.extract_strided_slice %104 {offsets = [0, 1], sizes = [1, 255], strides = [1, 1]} : vector<1x256xbf16> to vector<1x255xbf16>
    %128 = vector.extract_strided_slice %104 {offsets = [0, 0], sizes = [1, 1], strides = [1, 1]} : vector<1x256xbf16> to vector<1x1xbf16>
    %129 = tpu.concatenate %127, %128 in 1 : vector<1x255xbf16>, vector<1x1xbf16> -> vector<1x256xbf16>
    %130 = vector.broadcast %129 : vector<1x256xbf16> to vector<4x256xbf16>
    %131 = arith.mulf %48, %130 : vector<4x256xbf16>
    %132 = vector.extract_strided_slice %104 {offsets = [0, 15], sizes = [1, 241], strides = [1, 1]} : vector<1x256xbf16> to vector<1x241xbf16>
    %133 = vector.extract_strided_slice %104 {offsets = [0, 0], sizes = [1, 15], strides = [1, 1]} : vector<1x256xbf16> to vector<1x15xbf16>
    %134 = tpu.concatenate %132, %133 in 1 : vector<1x241xbf16>, vector<1x15xbf16> -> vector<1x256xbf16>
    %135 = vector.broadcast %134 : vector<1x256xbf16> to vector<4x256xbf16>
    %136 = arith.mulf %56, %135 : vector<4x256xbf16>
    %137 = vector.extract_strided_slice %104 {offsets = [0, 16], sizes = [1, 240], strides = [1, 1]} : vector<1x256xbf16> to vector<1x240xbf16>
    %138 = vector.extract_strided_slice %104 {offsets = [0, 0], sizes = [1, 16], strides = [1, 1]} : vector<1x256xbf16> to vector<1x16xbf16>
    %139 = tpu.concatenate %137, %138 in 1 : vector<1x240xbf16>, vector<1x16xbf16> -> vector<1x256xbf16>
    %140 = vector.broadcast %139 : vector<1x256xbf16> to vector<4x256xbf16>
    %141 = arith.mulf %63, %140 : vector<4x256xbf16>
    %142 = vector.extract_strided_slice %104 {offsets = [0, 17], sizes = [1, 239], strides = [1, 1]} : vector<1x256xbf16> to vector<1x239xbf16>
    %143 = vector.extract_strided_slice %104 {offsets = [0, 0], sizes = [1, 17], strides = [1, 1]} : vector<1x256xbf16> to vector<1x17xbf16>
    %144 = tpu.concatenate %142, %143 in 1 : vector<1x239xbf16>, vector<1x17xbf16> -> vector<1x256xbf16>
    %145 = vector.broadcast %144 : vector<1x256xbf16> to vector<4x256xbf16>
    %146 = arith.mulf %71, %145 : vector<4x256xbf16>
    %147 = tpu.concatenate %109, %114, %119, %124, %126, %131, %136, %141, %146 in 0 : vector<4x256xbf16>, vector<4x256xbf16>, vector<4x256xbf16>, vector<4x256xbf16>, vector<4x256xbf16>, vector<4x256xbf16>, vector<4x256xbf16>, vector<4x256xbf16>, vector<4x256xbf16> -> vector<36x256xbf16>
    %c0_31 = arith.constant 0 : index
    %c0_32 = arith.constant 0 : index
    %148 = vector.load %arg9[%c0_31, %c0_32] : memref<4x36xbf16, #tpu.memory_space<vmem>>, vector<4x36xbf16>
    %cst_33 = arith.constant dense<0.000000e+00> : vector<4x256xf32>
    %149 = tpu.matmul %148, %147, %cst_33 {dimension_numbers = #tpu.dot_dimension_numbers<[1], [0], [0], [1], [0, 0, 1, 1], [], []>} : vector<4x36xbf16>, vector<36x256xbf16>, vector<4x256xf32> -> vector<4x256xf32>
    %c0_34 = arith.constant 0 : index
    %c0_35 = arith.constant 0 : index
    %150 = vector.load %arg10[%c0_34, %c0_35] : memref<4x1xf32, #tpu.memory_space<vmem>>, vector<4x1xf32>
    %151 = vector.broadcast %150 : vector<4x1xf32> to vector<4x256xf32>
    %152 = arith.mulf %149, %151 : vector<4x256xf32>
    %c0_36 = arith.constant 0 : index
    %c0_37 = arith.constant 0 : index
    %153 = vector.load %arg11[%c0_36, %c0_37] : memref<4x1xf32, #tpu.memory_space<vmem>>, vector<4x1xf32>
    %154 = vector.broadcast %153 : vector<4x1xf32> to vector<4x256xf32>
    %155 = arith.addf %152, %154 : vector<4x256xf32>
    %cst_38 = arith.constant 0.000000e+00 : f32
    %156 = vector.broadcast %cst_38 : f32 to vector<4x256xf32>
    %157 = arith.maximumf %155, %156 : vector<4x256xf32>
    %158 = tpu.concatenate %157, %86 in 0 : vector<4x256xf32>, vector<4x256xf32> -> vector<8x256xf32>
    %c0_39 = arith.constant 0 : index
    %c0_40 = arith.constant 0 : index
    %c0_41 = arith.constant 0 : index
    %159 = vector.load %arg12[%c0_39, %c0_40, %c0_41] : memref<1x8x256xf32, #tpu.memory_space<vmem>>, vector<1x8x256xf32>
    %160 = vector.shape_cast %159 : vector<1x8x256xf32> to vector<8x256xf32>
    %161 = vector.shape_cast %158 : vector<8x256xf32> to vector<1x8x256xf32>
    tpu.vector_store %arg12[%c0_39, %c0_40, %c0_41], %161 {strides = array<i32>} : memref<1x8x256xf32, #tpu.memory_space<vmem>>, vector<1x8x256xf32>,
    return
  }
  func.func @transform_0(%arg0: i32) -> (i32, i32, i32) {
    %c0_i32 = arith.constant 0 : i32
    %c0_i32_0 = arith.constant 0 : i32
    %c0_i32_1 = arith.constant 0 : i32
    return %arg0, %c0_i32, %c0_i32_0 : i32, i32, i32
  }
  func.func @transform_1(%arg0: i32) -> (i32, i32, i32) {
    %c0_i32 = arith.constant 0 : i32
    %c0_i32_0 = arith.constant 0 : i32
    %c0_i32_1 = arith.constant 0 : i32
    return %arg0, %c0_i32, %c0_i32_0 : i32, i32, i32
  }
  func.func @transform_2(%arg0: i32) -> (i32, i32) {
    %c0_i32 = arith.constant 0 : i32
    %c0_i32_0 = arith.constant 0 : i32
    %c0_i32_1 = arith.constant 0 : i32
    return %c0_i32, %c0_i32_0 : i32, i32
  }
  func.func @transform_3(%arg0: i32) -> (i32, i32) {
    %c0_i32 = arith.constant 0 : i32
    %c0_i32_0 = arith.constant 0 : i32
    %c0_i32_1 = arith.constant 0 : i32
    return %c0_i32, %c0_i32_0 : i32, i32
  }
  func.func @transform_4(%arg0: i32) -> (i32, i32) {
    %c0_i32 = arith.constant 0 : i32
    %c0_i32_0 = arith.constant 0 : i32
    %c0_i32_1 = arith.constant 0 : i32
    return %c0_i32, %c0_i32_0 : i32, i32
  }
  func.func @transform_5(%arg0: i32) -> (i32, i32) {
    %c0_i32 = arith.constant 0 : i32
    %c0_i32_0 = arith.constant 0 : i32
    %c0_i32_1 = arith.constant 0 : i32
    return %c0_i32, %c0_i32_0 : i32, i32
  }
  func.func @transform_6(%arg0: i32) -> (i32, i32) {
    %c0_i32 = arith.constant 0 : i32
    %c0_i32_0 = arith.constant 0 : i32
    %c0_i32_1 = arith.constant 0 : i32
    return %c0_i32, %c0_i32_0 : i32, i32
  }
  func.func @transform_7(%arg0: i32) -> (i32, i32) {
    %c0_i32 = arith.constant 0 : i32
    %c0_i32_0 = arith.constant 0 : i32
    %c0_i32_1 = arith.constant 0 : i32
    return %c0_i32, %c0_i32_0 : i32, i32
  }
  func.func @transform_8(%arg0: i32) -> (i32, i32) {
    %c0_i32 = arith.constant 0 : i32
    %c0_i32_0 = arith.constant 0 : i32
    %c0_i32_1 = arith.constant 0 : i32
    return %c0_i32, %c0_i32_0 : i32, i32
  }
  func.func @transform_9(%arg0: i32) -> (i32, i32) {
    %c0_i32 = arith.constant 0 : i32
    %c0_i32_0 = arith.constant 0 : i32
    %c0_i32_1 = arith.constant 0 : i32
    return %c0_i32, %c0_i32_0 : i32, i32
  }
  func.func @transform_10(%arg0: i32) -> (i32, i32) {
    %c0_i32 = arith.constant 0 : i32
    %c0_i32_0 = arith.constant 0 : i32
    %c0_i32_1 = arith.constant 0 : i32
    return %c0_i32, %c0_i32_0 : i32, i32
  }
  func.func @transform_11(%arg0: i32) -> (i32, i32, i32) {
    %c0_i32 = arith.constant 0 : i32
    %c0_i32_0 = arith.constant 0 : i32
    %c0_i32_1 = arith.constant 0 : i32
    return %arg0, %c0_i32, %c0_i32_0 : i32, i32, i32
  }
}

</mosaic_0001>

<bundles_post_ra>
// kernel: mixpool_forward.1
= control target key start
LH: loop header
LB: loop body
LE: loop exit
PB: predicated region body
PF: predicated region fallthrough
CT: control target
= control target key end

     0   :  { %s1533_s19 = smov 0   ;;  %s2188_s0 = inlined_call_operand.vmem [shape: bf16[2,4,256], index: 0, kind: input, shape index: {}]   ;;  %s2189_s1 = inlined_call_operand.vmem [shape: f32[2,1,256], index: 1, kind: input, shape index: {}]   ;;  %s2190_s2 = inlined_call_operand.vmem [shape: s32[2,256], index: 2, kind: input, shape index: {}]   ;;  %s2191_s3 = inlined_call_operand.vmem [shape: bf16[12,36], index: 3, kind: input, shape index: {}]   ;;  %s2192_s4 = inlined_call_operand.vmem [shape: f32[12,1], index: 4, kind: input, shape index: {}]   ;;  %s2193_s5 = inlined_call_operand.vmem [shape: f32[12,1], index: 5, kind: input, shape index: {}]   ;;  %s2194_s6 = inlined_call_operand.vmem [shape: f32[8,1], index: 6, kind: input, shape index: {}]   ;;  %s2195_s7 = inlined_call_operand.<no memory space> [shape: f32[1,1], index: 7, kind: input, shape index: {}]   ;;  %s2196_s8 = inlined_call_operand.vmem [shape: bf16[4,36], index: 8, kind: input, shape index: {}]   ;;  %s2197_s9 = inlined_call_operand.vmem [shape: f32[4,1], index: 9, kind: input, shape index: {}]   ;;  %s2198_s10 = inlined_call_operand.vmem [shape: f32[4,1], index: 10, kind: input, shape index: {}]   ;;  %s2199_s11 = inlined_call_operand.vmem [shape: f32[2,8,256], index: 11, kind: output, shape index: {}]  }
   0x1   :  { %v16_v0 = vstv %s2195_s7 }
   0x2   :  { %17 = vst [vmem:[#allocation2] sm:$0x1] %v16_v0 }
   0x3 LB: > { %s1405_s20 = sadd.s32 4294967295, %s1458_s19   ;;  %p1409_p0 = scmp.ge.s32.totalorder %s1458_s19, 1  ;;  %s1458_s19 = sphi %s1533_s19, %s23_s19  }
   0x4   : > { %p348_p1 = scmp.lt.s32.totalorder %s1458_s19, 3 }
   0x6   : > { %p349_p2 = pnand %p1409_p0, %p348_p1 }
   0x7   : > { %p392_p3 = scmp.lt.s32.totalorder (!%p349_p2), %s1405_s20, 1  ;;  %s1460_s24 = smov (!%p349_p2), 17  }
   0x8   : > { %352 = sbr.rel (%p349_p2) target bundleno = 736 (0x2e0), region = 64  ;;  %s1461_s25 = smov (!%p349_p2), 16  }
   0x9   : > { %s1462_s26 = smov (!%p349_p2), 15   ;;  %s1463_s27 = smov (!%p349_p2), 127  }
   0xa   : > { %s1464_s28 = smov (!%p349_p2), 113   ;;  %s1465_s29 = smov (!%p349_p2), 112  }
   0xb   : > { %s1467_s30 = smov (!%p349_p2), 1   ;;  %s1468_s12 = smov (!%p349_p2), 111  }
   0xd   : > { %s2306_s20 = smov (!%p392_p3, %s1405_s20), 1  ;;  %v1466_v22 = vmov 0   ;;  %v410_v32 = vld [vmem:[%s2190_s2] ss:$2 sm:$0x3] }
   0xe   : > { %s1428_s7 = sshll.u32 %s2306_s20, 2  ;;  %1450 = vset.pattern.permute.xlu1 %v1466_v22  ;;  %1449 = vset.pattern.permute.xlu0 %v1466_v22  ;;  %v1609_v33 = vld [vmem:[%s2190_s2 + $0x1] ss:$2 sm:$0x3]  ;;  %vm413_vm0 = vcmp.ge.s32.totalorder %v410_v32, 16  ;;  %vm414_vm2 = vcmp.lt.s32.totalorder %v410_v32, 240 }
   0xf   : > { %s396_s23 = scalar_lea.vmem %s2188_s0, %s1428_s7  ;;  %1451 = vset.pattern.permute.xlu2 %v1466_v22  ;;  %vm415_vm1 = vcmp.ge.s32.totalorder %v1609_v33, 1  ;;  %vm416_vm4 = vcmp.le.s32.totalorder %v1609_v33, 14  ;;  %v488_v37 = vsel %vm413_vm0, 1, %v1466_v22  ;;  %v725_v46 = vsel %vm414_vm2, 1, %v1466_v22  ;;  %s1412_s17 = sshll.u32 %s2306_s20, 1 }
  0x10   : > { %v1547_v1 = vld [vmem:[%s396_s23] sm:$0xf]  ;;  %vm440_vm3 = vmand %vm413_vm0, %vm415_vm1  ;;  %v630_v36 = vsel %vm416_vm4, 1, %v1466_v22  ;;  %v489_v43 = vperm.slane %v488_v37, 0  ;;  %v490_v44 = vperm.slane %v488_v37, 1  ;;  %v726_v55 = vperm.slane %v725_v46, 0  ;;  %s400_s21 = scalar_lea.vmem %s2189_s1, %s1412_s17 }
  0x11   : > { %418 = vst [vmem:[#allocation1] ss:$4 sm:$0xff] %v1547_v1  ;;  %vm677_vm5 = vmand %vm414_vm2, %vm415_vm1  ;;  %v441_v38 = vsel %vm440_vm3, 1, %v1466_v22  ;;  %v631_v40 = vperm.slane %v630_v36, 0  ;;  %v632_v41 = vperm.slane %v630_v36, 1  ;;  %v727_v56 = vperm.slane %v725_v46, 1 }
  0x12   : > { %vm772_vm6 = vmand %vm414_vm2, %vm416_vm4  ;;  %v678_v42 = vsel %vm677_vm5, 1, %v1466_v22  ;;  %v442_v47 = vperm.slane %v441_v38, 0  ;;  %v443_v48 = vperm.slane %v441_v38, 1  ;;  %vm1647_vm9 = vcmp.eq.s32.totalorder %v489_v43, 1  ;;  %s1429_s13 = sshll.u32 %s2306_s20, 4 }
  0x13   : > { %v773_v49 = vsel %vm772_vm6, 1, %v1466_v22  ;;  %v679_v51 = vperm.slane %v678_v42, 0  ;;  %v680_v52 = vperm.slane %v678_v42, 1  ;;  %vm1639_vm7 = vcmp.eq.s32.totalorder %v631_v40, 1  ;;  %s405_s16 = scalar_lea.vmem %s2199_s11, %s1429_s13 }
  0x14   : > { %vm1643_vm8 = vcmp.eq.s32.totalorder %v632_v41, 1  ;;  %vm1651_vm10 = vcmp.eq.s32.totalorder %v490_v44, 1  ;;  %v774_v59 = vperm.slane %v773_v49, 0  ;;  %v775_v60 = vperm.slane %v773_v49, 1 }
  0x15   : > { %vm1655_vm11 = vcmp.eq.s32.totalorder %v442_v47, 1  ;;  %vm1659_vm12 = vcmp.eq.s32.totalorder %v443_v48, 1  ;;  %vm635_vm13 = vmpackc.low %vm1643_vm8, %vm1639_vm7  ;;  %vm1667_vm14 = vcmp.eq.s32.totalorder %v679_v51, 1  ;;  %vm1671_vm15 = vcmp.eq.s32.totalorder %v680_v52, 1 }
  0x16   : > { %vm493_vm2 = vmpackc.low %vm1651_vm10, %vm1647_vm9  ;;  %vm1679_vm3 = vcmp.eq.s32.totalorder %v726_v55, 1  ;;  %vm1683_vm5 = vcmp.eq.s32.totalorder %v727_v56, 1  ;;  %vm776_vm7 = vcmp.eq.s32.totalorder %v774_v59, 1  ;;  %vm777_vm8 = vcmp.eq.s32.totalorder %v775_v60, 1 }
  0x17   : > { %vm446_vm6 = vmpackc.low %vm1659_vm12, %vm1655_vm11  ;;  %v583_v57 = vsel %vm415_vm1, 1, %v1466_v22 }
  0x18   : > { %v419_v2 = vld.sshfl [vmem:[#allocation1 + $0x8] sm:$0xff pattern:$0x73625140]  ;;  %vm683_vm9 = vmpackc.low %vm1671_vm15, %vm1667_vm14  ;;  %v584_v63 = vperm.slane %v583_v57, 0  ;;  %v585_v0 = vperm.slane %v583_v57, 1 }
  0x19   : > { %421 = vrot.lane.b32.xlu0 %v419_v2, %s1460_s24  ;;  %423 = vst [vmem:[#allocation1] ss:$4 sm:$0xff] %v1547_v1  ;;  %vm730_vm10 = vmpackc.low %vm1683_vm5, %vm1679_vm3 }
  0x1a   : > { %vm778_vm11 = vmpackc.low %vm777_vm8, %vm776_vm7 }
  0x1b   : > { %vm535_vm12 = vmand %vm413_vm0, %vm416_vm4  ;;  %vm2202_vm0 = vcmask 1039360  }
  0x20   : > { %v424_v3 = vld.sshfl [vmem:[#allocation1] sm:$0xff pattern:$0x73625140]  ;;  %v426_v4 = vld.sshfl [vmem:[#allocation1 + $0x8] sm:$0xff pattern:$0x73625140] }
  0x21   : > { %428 = vrot.lane.b32.xlu1 %v424_v3, %s1460_s24  ;;  %466 = vst [vmem:[#allocation1] ss:$4 sm:$0xff] %v1547_v1  ;;  %430 = vrot.lane.b32.xlu2 %v426_v4, %s1460_s24 }
  0x28   : > { %v467_v5 = vld.sshfl [vmem:[#allocation1 + $0x8] sm:$0xff pattern:$0x73625140] }
  0x29   : > { %469 = vrot.lane.b32.xlu0 %v467_v5, %s1461_s25  ;;  %471 = vst [vmem:[#allocation1] ss:$4 sm:$0xff] %v1547_v1 }
  0x30   : > { %v472_v6 = vld.sshfl [vmem:[#allocation1] sm:$0xff pattern:$0x73625140]  ;;  %v474_v7 = vld.sshfl [vmem:[#allocation1 + $0x8] sm:$0xff pattern:$0x73625140] }
  0x31   : > { %476 = vrot.lane.b32.xlu1 %v472_v6, %s1461_s25  ;;  %513 = vst [vmem:[#allocation1] ss:$4 sm:$0xff] %v1547_v1  ;;  %478 = vrot.lane.b32.xlu2 %v474_v7, %s1461_s25  ;;  %v1694_v6 = vsel %vm635_vm13, 65537, %v1466_v22  ;;  %v494_v7 = vsel %vm493_vm2, 65537, %v1466_v22  ;;  %vm2204_vm2 = vcmask 924672  }
  0x32   : > { %v637_v55 = vperm.slane %v1694_v6, 0 }
  0x34   : > { %v639_v3 = vunpack.c.l.b16 %v637_v55 }
  0x38   : > { %v514_v8 = vld.sshfl [vmem:[#allocation1 + $0x8] sm:$0xff pattern:$0x73625140] }
  0x39   : > { %516 = vrot.lane.b32.xlu0 %v514_v8, %s1462_s26  ;;  %518 = vst [vmem:[#allocation1] ss:$4 sm:$0xff] %v1547_v1  ;;  %v638_v8 = vperm.slane %v1694_v6, 4 }
  0x40   : > { %v519_v9 = vld.sshfl [vmem:[#allocation1] sm:$0xff pattern:$0x73625140]  ;;  %v521_v10 = vld.sshfl [vmem:[#allocation1 + $0x8] sm:$0xff pattern:$0x73625140] }
  0x41   : > { %523 = vrot.lane.b32.xlu1 %v519_v9, %s1462_s26  ;;  %561 = vst [vmem:[#allocation1] ss:$4 sm:$0xff] %v1547_v1  ;;  %525 = vrot.lane.b32.xlu2 %v521_v10, %s1462_s26  ;;  %v1712_v10 = vsel %vm683_vm9, 65537, %v1466_v22 }
  0x48   : > { %v562_v11 = vld.sshfl [vmem:[#allocation1 + $0x8] sm:$0xff pattern:$0x73625140] }
  0x49   : > { %566 = vst [vmem:[#allocation1] ss:$4 sm:$0xff] %v1547_v1 }
  0x50   : > { %v567_v12 = vld.sshfl [vmem:[#allocation1] sm:$0xff pattern:$0x73625140]  ;;  %v569_v13 = vld.sshfl [vmem:[#allocation1 + $0x8] sm:$0xff pattern:$0x73625140] }
  0x51   : > { %608 = vst [vmem:[#allocation1] ss:$4 sm:$0xff] %v1547_v1 }
  0x58   : > { %v609_v14 = vld.sshfl [vmem:[#allocation1] sm:$0xff pattern:$0x73625140]  ;;  %v611_v15 = vld.sshfl [vmem:[#allocation1 + $0x8] sm:$0xff pattern:$0x73625140] }
  0x59   : > { %613 = vrot.lane.b32.xlu0 %v609_v14, %s1463_s27  ;;  %620 = vst [vmem:[#allocation1] ss:$4 sm:$0xff] %v1547_v1  ;;  %v1719_v14 = vsel %vm778_vm11, 65537, %v1466_v22 }
  0x60   : > { %v621_v16 = vld.sshfl [vmem:[#allocation1] sm:$0xff pattern:$0x73625140] }
  0x61   : > { %615 = vrot.lane.b32.xlu0 %v611_v15, %s1463_s27  ;;  %623 = vrot.lane.b32.xlu1 %v621_v16, %s1463_s27  ;;  %655 = vst [vmem:[#allocation1] ss:$4 sm:$0xff] %v1547_v1  ;;  %v536_v15 = vsel %vm535_vm12, 1, %v1466_v22  ;;  %v686_v16 = vperm.slane %v1712_v10, 4 }
  0x62   : > { %v537_v36 = vperm.slane %v536_v15, 0  ;;  %v538_v37 = vperm.slane %v536_v15, 1 }
  0x63   : > { %v694_v42 = vunpack.c.l.b16 %v686_v16  ;;  %v695_v43 = vunpack.c.h.b16 %v686_v16 }
  0x64   : > { %vm1747_vm14 = vcmp.eq.s32.totalorder %v537_v36, 1  ;;  %vm1751_vm15 = vcmp.eq.s32.totalorder %v538_v37, 1  ;;  %v939_v36 = vld [vmem:[%s2194_s6] sm:$0xff] }
  0x65   : > { %vm541_vm9 = vmpackc.low %vm1751_vm15, %vm1747_vm14  ;;  %vm432_vm15 = vcmask 138240  }
  0x68   : > { %v658_v17 = vld.sshfl [vmem:[#allocation1 + $0x8] sm:$0xff pattern:$0x73625140]  ;;  %v656_v18 = vld.sshfl [vmem:[#allocation1] sm:$0xff pattern:$0x73625140] }
  0x69   : > { %662 = vrot.lane.b32.xlu1 %v658_v17, %s1464_s28  ;;  %660 = vrot.lane.b32.xlu0 %v656_v18, %s1464_s28  ;;  %667 = vst [vmem:[#allocation1] ss:$4 sm:$0xff] %v1547_v1  ;;  %v1724_v17 = vunpack.c.l.b16 %v1466_v22  ;;  %v646_v18 = vunpack.c.l.b16 %v638_v8 }
  0x6b   : > { %vm650_vm4 = vcmp.ne.s32.totalorder %v646_v18, %v1724_v17  ;;  %vm698_vm5 = vcmp.ne.s32.totalorder %v694_v42, %v1724_v17 }
  0x70   : > { %v668_v19 = vld.sshfl [vmem:[#allocation1] sm:$0xff pattern:$0x73625140] }
  0x71   : > { %670 = vrot.lane.b32.xlu2 %v668_v19, %s1464_s28  ;;  %703 = vst [vmem:[#allocation1] ss:$4 sm:$0xff] %v1547_v1  ;;  %v647_v19 = vunpack.c.h.b16 %v638_v8 }
  0x78   : > { %v706_v20 = vld.sshfl [vmem:[#allocation1 + $0x8] sm:$0xff pattern:$0x73625140]  ;;  %v704_v21 = vld.sshfl [vmem:[#allocation1] sm:$0xff pattern:$0x73625140] }
  0x79   : > { %710 = vrot.lane.b32.xlu1 %v706_v20, %s1465_s29  ;;  %708 = vrot.lane.b32.xlu0 %v704_v21, %s1465_s29  ;;  %715 = vst [vmem:[#allocation1] ss:$4 sm:$0xff] %v1547_v1 }
  0x7b   : > { %v1593_v27 = vpop.permute.xlu2 %430 }
  0x80   : > { %v716_v23 = vld.sshfl [vmem:[#allocation1] sm:$0xff pattern:$0x73625140] }
  0x81   : > { %718 = vrot.lane.b32.xlu2 %v716_v23, %s1465_s29  ;;  %750 = vst [vmem:[#allocation1] ss:$4 sm:$0xff] %v1547_v1  ;;  %564 = vrot.lane.b32.xlu0 %v562_v11, %s1467_s30  ;;  %v1715_v11 = vsel %vm730_vm10, 65537, %v1466_v22  ;;  %v1728_v23 = vunpack.c.h.b16 %v1466_v22  ;;  %vm2206_vm10 = vcmask 916480  }
  0x82   : > { %v733_v20 = vperm.slane %v1715_v11, 4 }
  0x83   : > { %vm651_vm13 = vcmp.ne.s32.totalorder %v647_v19, %v1728_v23  ;;  %v732_v19 = vperm.slane %v1715_v11, 0 }
  0x84   : > { %v741_v46 = vunpack.c.l.b16 %v733_v20  ;;  %v742_v47 = vunpack.c.h.b16 %v733_v20  ;;  %vm652_vm3 = vmpackc.low %vm651_vm13, %vm650_vm4  ;;  %vm2200_vm13 = vcmask 908288  }
  0x86   : > { %vm745_vm7 = vcmp.ne.s32.totalorder %v741_v46, %v1724_v17  ;;  %vm746_vm8 = vcmp.ne.s32.totalorder %v742_v47, %v1728_v23  ;;  %v780_v47 = vperm.slane %v1719_v14, 0 }
  0x87   : > { %vm1790_vm4 = vmpackc.low %vm746_vm8, %vm745_vm7  ;;  %vm1844_vm7 = vcmp.eq.s32.totalorder %v585_v0, 1 }
  0x88   : > { %v753_v24 = vld.sshfl [vmem:[#allocation1 + $0x8] sm:$0xff pattern:$0x73625140]  ;;  %v751_v25 = vld.sshfl [vmem:[#allocation1] sm:$0xff pattern:$0x73625140]  ;;  %v782_v6 = vunpack.c.l.b16 %v780_v47 }
  0x89   : > { %757 = vrot.lane.b32.xlu2 %v753_v24, %s1468_s12  ;;  %755 = vrot.lane.b32.xlu1 %v751_v25, %s1468_s12  ;;  %762 = vst [vmem:[#allocation1] ss:$4 sm:$0xff] %v1547_v1  ;;  %v496_v24 = vperm.slane %v494_v7, 4  ;;  %v781_v25 = vperm.slane %v1719_v14, 4  ;;  %v735_v14 = vunpack.c.h.b16 %v732_v19 }
  0x8b   : > { %v1595_v28 = vpop.permute.xlu0 %421  ;;  %v1599_v30 = vpop.permute.xlu2 %478  ;;  %v1743_v48 = vunpack.c.l.b16 %v496_v24  ;;  %v1745_v49 = vunpack.c.h.b16 %v496_v24  ;;  %v789_v51 = vunpack.c.l.b16 %v781_v25  ;;  %v790_v52 = vunpack.c.h.b16 %v781_v25  ;;  %v903_v24 = vld [vmem:[%s2192_s4] sm:$0xff] }
  0x8c   : > { %907 = vperm.xlu0 %1449, %v903_v24  }
  0x8d   : > { %vm793_vm11 = vcmp.ne.s32.totalorder %v789_v51, %v1724_v17  ;;  %vm794_vm1 = vcmp.ne.s32.totalorder %v790_v52, %v1728_v23 }
  0x8e   : > { %vm1824_vm14 = vmpackc.low %vm794_vm1, %vm793_vm11  ;;  %vm643_vm1 = vcmp.ne.s32.totalorder %v639_v3, %v1724_v17 }
  0x90   : > { %v763_v26 = vld.sshfl [vmem:[#allocation1] sm:$0xff pattern:$0x73625140] }
  0x91   : > { %571 = vrot.lane.b32.xlu1 %v567_v12, %s1467_s30  ;;  %765 = vrot.lane.b32.xlu2 %v763_v26, %s1468_s12  ;;  %810 = vst [vmem:[#allocation1] ss:$4 sm:$0xff] %v1547_v1  ;;  %v447_v12 = vsel %vm446_vm6, 65537, %v1466_v22  ;;  %vm699_vm6 = vcmp.ne.s32.totalorder %v695_v43, %v1728_v23 }
  0x92   : > { %v448_v21 = vperm.slane %v447_v12, 0  ;;  %v449_v26 = vperm.slane %v447_v12, 4  ;;  %vm1779_vm12 = vmpackc.low %vm699_vm6, %vm698_vm5  ;;  %vm1840_vm6 = vcmp.eq.s32.totalorder %v584_v63, 1 }
  0x93   : > { %v1597_v29 = vpop.permute.xlu1 %428  ;;  %vm588_vm8 = vmpackc.low %vm1844_vm7, %vm1840_vm6  ;;  %vm2251_vm7 = vcmask 130048  }
  0x94   : > { %v1763_v58 = vunpack.c.l.b16 %v448_v21  ;;  %v1765_v59 = vunpack.c.h.b16 %v448_v21  ;;  %v1769_v60 = vunpack.c.l.b16 %v449_v26  ;;  %v1786_v2 = vunpack.c.h.b16 %v449_v26  ;;  %v919_v21 = vld [vmem:[%s2193_s5] sm:$0xff] }
  0x99   : > { %573 = vrot.lane.b32.xlu2 %v569_v13, %s1467_s30  ;;  %v495_v13 = vperm.slane %v494_v7, 0  ;;  %v685_v7 = vperm.slane %v1712_v10, 0  ;;  %923 = vperm.xlu1 %1450, %v919_v21   ;;  %v433_v10 = vsel %vm432_vm15, %v1597_v29, %v1593_v27 }
  0x9b   : > { %v1601_v31 = vpop.permute.xlu0 %469  ;;  %v1614_v35 = vpop.permute.xlu2 %525  ;;  %v1731_v32 = vunpack.c.l.b16 %v495_v13  ;;  %v1737_v41 = vunpack.c.h.b16 %v495_v13  ;;  %v812_v13 = vld.sshfl [vmem:[#allocation1 + $0x8] sm:$0xff pattern:$0x73625140]  ;;  %v687_v43 = vunpack.c.l.b16 %v685_v7  ;;  %v688_v51 = vunpack.c.h.b16 %v685_v7 }
  0x9d   : > { %vm502_vm5 = vcmp.ne.s32.totalorder %v1737_v41, %v1728_v23  ;;  %vm692_vm11 = vcmp.ne.s32.totalorder %v688_v51, %v1728_v23 }
  0xa1   : > { %942 = vperm.xlu2 %1451, %v939_v36  }
  0xa3   : > { %v1611_v34 = vpop.permute.xlu1 %476 }
  0xab   : > { %v1628_v39 = vpop.permute.xlu0 %516 }
  0xb3   : > { %v1633_v45 = vpop.permute.xlu1 %523 }
  0xcb   : > { %v1637_v50 = vpop.permute.xlu2 %670  ;;  %v1691_v4 = vpop.permute.xlu0 %613 }
  0xd3   : > { %v624_v5 = vpop.permute.xlu1 %623  ;;  %v1733_v38 = vpop.permute.xlu0 %615 }
  0xd4   : > { %v628_v56 = vsel %vm2202_vm0, %v1733_v38, %v624_v5  ;;  %v640_v5 = vunpack.c.h.b16 %v637_v55  ;;  %v618_v61 = vsel %vm2202_vm0, %v1691_v4, %v1733_v38  ;;  %v589_v4 = vsel %vm588_vm8, 65537, %v1466_v22 }
  0xd5   : > { %v1777_v33 = vsel %vm652_vm3, %v628_v56, 0  ;;  %vm501_vm3 = vcmp.ne.s32.totalorder %v1731_v32, %v1724_v17  ;;  %v734_v56 = vunpack.c.l.b16 %v732_v19  ;;  %vm691_vm0 = vcmp.ne.s32.totalorder %v687_v43, %v1724_v17 }
  0xd6   : > { %v816_v15 = vrot.slane %v1777_v33, 6  ;;  %vm1910_vm6 = vmpackc.low %vm502_vm5, %vm501_vm3  ;;  %v590_v19 = vperm.slane %v589_v4, 0  ;;  %vm786_vm3 = vcmp.ne.s32.totalorder %v782_v6, %v1724_v17  ;;  %v591_v41 = vperm.slane %v589_v4, 4 }
  0xd7   : > { %vm1920_vm8 = vmpackc.low %vm692_vm11, %vm691_vm0 }
  0xd8   : > { %v593_v24 = vunpack.c.h.b16 %v590_v19  ;;  %v599_v36 = vunpack.c.l.b16 %v591_v41 }
  0xdb   : > { %v1709_v9 = vpop.permute.xlu2 %718  ;;  %v1735_v40 = vpop.permute.xlu1 %662 }
  0xdc   : > { %v675_v62 = vsel %vm2204_vm2, %v1735_v40, %v1637_v50  ;;  %v1804_v50 = vsel %vm541_vm9, 65537, %v1466_v22  ;;  %v1807_v8 = vpop.permute.xlu0 %660 }
  0xdd   : > { %v1814_v16 = vsel %vm1779_vm12, %v675_v62, 0  ;;  %v543_v37 = vperm.slane %v1804_v50, 0  ;;  %vm644_vm12 = vcmp.ne.s32.totalorder %v640_v5, %v1728_v23  ;;  %v544_v55 = vperm.slane %v1804_v50, 4  ;;  %v959_v62 = vld [vmem:[#allocation2] sm:$0x1] }
  0xde   : > { %v820_v42 = vrot.slane %v1814_v16, 4  ;;  %vm1886_vm9 = vmpackc.low %vm644_vm12, %vm643_vm1  ;;  %v783_v50 = vunpack.c.h.b16 %v780_v47  ;;  %vm738_vm12 = vcmp.ne.s32.totalorder %v734_v56, %v1724_v17  ;;  %962 = vperm.xlu1 %1450, %v959_v62   ;;  %v665_v32 = vsel %vm2204_vm2, %v1807_v8, %v1735_v40 }
  0xdf   : > { %v545_v57 = vunpack.c.l.b16 %v543_v37  ;;  %v546_v38 = vunpack.c.h.b16 %v543_v37  ;;  %v552_v5 = vunpack.c.l.b16 %v544_v55  ;;  %vm2247_vm2 = vcmp.ne.s32.totalorder %v1743_v48, %v1724_v17 }
  0xe0   : > { %vm787_vm5 = vcmp.ne.s32.totalorder %v783_v50, %v1728_v23  ;;  %v481_v8 = vsel %vm2251_vm7, %v1611_v34, %v1599_v30  ;;  %v1961_v48 = vsel %vm1920_vm8, %v665_v32, 0  ;;  %v592_v30 = vunpack.c.l.b16 %v590_v19 }
  0xe1   : > { %vm550_vm0 = vcmp.ne.s32.totalorder %v546_v38, %v1728_v23  ;;  %v600_v37 = vunpack.c.h.b16 %v591_v41  ;;  %vm2260_vm8 = vcmask 121856   ;;  %v819_v51 = vrot.slane %v1961_v48, 4 }
  0xe3   : > { %v1741_v44 = vpop.permute.xlu2 %757 }
  0xeb   : > { %v1809_v12 = vpop.permute.xlu1 %710  ;;  %v766_v20 = vpop.permute.xlu2 %765 }
  0xec   : > { %v723_v18 = vsel %vm2206_vm10, %v1809_v12, %v1709_v9  ;;  %v770_v11 = vsel %vm2200_vm13, %v1741_v44, %v766_v20  ;;  %vm455_vm13 = vcmp.ne.s32.totalorder %v1765_v59, %v1728_v23  ;;  %v709_v7 = vpop.permute.xlu0 %708 }
  0xed   : > { %v1836_v9 = vsel %vm1790_vm4, %v723_v18, 0  ;;  %vm2201_vm4 = vcmask 1041408   ;;  %v1861_v46 = vsel %vm1824_vm14, %v770_v11, 0  ;;  %vm2205_vm14 = vcmask 1045504  }
  0xee   : > { %v824_v52 = vrot.slane %v1836_v9, 2  ;;  %v873_v53 = vsel %vm2201_vm4, %v1861_v46, 0  ;;  %v847_v54 = vsel %vm2201_vm4, %v812_v13, %v816_v15  ;;  %vm2203_vm4 = vcmask 1043456   ;;  %v811_v11 = vld.sshfl [vmem:[#allocation1] sm:$0xff pattern:$0x73625140] }
  0xef   : > { %894 = vmatpush.bf16.msra.mxu1 %v873_v53  ;;  %v851_v0 = vsel %vm2203_vm4, %v847_v54, %v820_v42  ;;  %vm739_vm4 = vcmp.ne.s32.totalorder %v735_v14, %v1728_v23  ;;  %v553_v15 = vunpack.c.h.b16 %v544_v55  ;;  %v1916_v18 = vsel %vm1886_vm9, %v618_v61, 0 }
  0xf0   : > { %v856_v3 = vsel %vm2205_vm14, %v851_v0, %v824_v52  ;;  %vm549_vm9 = vcmp.ne.s32.totalorder %v545_v57, %v1724_v17  ;;  %vm740_vm11 = vmpackc.low %vm739_vm4, %vm738_vm12  ;;  %v713_v40 = vsel %vm2206_vm10, %v709_v7, %v1809_v12  ;;  %vm2248_vm14 = vcmp.ne.s32.totalorder %v1745_v49, %v1728_v23 }
  0xf1   : > { %vm1946_vm1 = vmpackc.low %vm2248_vm14, %vm2247_vm2  ;;  %vm556_vm12 = vcmp.ne.s32.totalorder %v552_v5, %v1724_v17  ;;  %v815_v12 = vrot.slane %v1916_v18, 6  ;;  %vm557_vm10 = vcmp.ne.s32.totalorder %v553_v15, %v1728_v23  ;;  %vm2255_vm14 = vcmp.ne.s32.totalorder %v1763_v58, %v1724_v17  ;;  %v1430_v5 = vld [vmem:[%s2191_s3] sm:$0x30] }
  0xf2   : > { %vm2252_vm4 = vmmov %vm2251_vm7  ;;  %v1982_v25 = vsel %vm740_vm11, %v713_v40, 0  ;;  %v1990_v58 = vsel %vm1946_vm1, %v481_v8, 0 }
  0xf3   : > { %895 = vmatpush.bf16.msra.mxu1 %v856_v3  ;;  %v486_v21 = vsel %vm2252_vm4, %v1601_v31, %v1611_v34  ;;  %vm1965_vm2 = vmpackc.low %vm787_vm5, %vm786_vm3  ;;  %v438_v34 = vsel %vm432_vm15, %v1595_v28, %v1597_v29  ;;  %v528_v28 = vsel %vm2260_vm8, %v1633_v45, %v1614_v35  ;;  %vm2261_vm3 = vcmask 908288   ;;  %v1418_v3 = vld [vmem:[%s2191_s3] sm:$0xf] }
  0xf4   : > { %vm1975_vm7 = vmpackc.low %vm455_vm13, %vm2255_vm14  ;;  %v1986_v42 = vsel %vm1910_vm6, %v486_v21, 0  ;;  %vm2265_vm5 = vcmask 1041408   ;;  %v823_v52 = vrot.slane %v1982_v25, 2  ;;  %vm596_vm4 = vcmp.ne.s32.totalorder %v592_v30, %v1724_v17 }
  0xf5   : > { %vm1996_vm13 = vmpackc.low %vm550_vm0, %vm549_vm9  ;;  %vm2266_vm9 = vcmp.ne.s32.totalorder %v1769_v60, %v1724_v17  ;;  %vm604_vm14 = vcmp.ne.s32.totalorder %v600_v37, %v1728_v23  ;;  %v801_v60 = vrot.slane %v1990_v58, 6  ;;  %v2047_v54 = vsel %vm1975_vm7, %v438_v34, 0 }
  0xf6   : > { %vm2009_vm1 = vmpackc.low %vm557_vm10, %vm556_vm12  ;;  %vm2267_vm10 = vcmp.ne.s32.totalorder %v1786_v2, %v1728_v23  ;;  %vm597_vm12 = vcmp.ne.s32.totalorder %v593_v24, %v1728_v23  ;;  %v574_v23 = vpop.permute.xlu2 %573  ;;  %v1419_v41 = vor.u32 %v1430_v5, %v1418_v3 }
  0xf7   : > { %vm2264_vm6 = vmmov %vm2260_vm8  ;;  %v2043_v53 = vsel %vm2009_vm1, %v528_v28, 0  ;;  %vm575_vm8 = vcmask 7168  }
  0xf8   : > { %v533_v47 = vsel %vm2264_vm6, %v1628_v39, %v1633_v45  ;;  %vm463_vm0 = vmpackc.low %vm2267_vm10, %vm2266_vm9  ;;  %v800_v45 = vrot.slane %v1986_v42, 6  ;;  %vm2269_vm6 = vcmask 1043456   ;;  %vm2270_vm9 = vcmask 1045504  }
  0xf9   : > { %vm2268_vm11 = vmmov %vm2265_vm5  ;;  %v2039_v2 = vsel %vm1996_vm13, %v533_v47, 0  ;;  %v2049_v55 = vsel %vm463_vm0, %v433_v10, 0  ;;  %v805_v61 = vrot.slane %v2043_v53, 4 }
  0xfa   : > { %v804_v57 = vrot.slane %v2039_v2, 4  ;;  %vm2271_vm7 = vmmov %vm2268_vm11 }
  0xfb   : > { %v756_v26 = vpop.permute.xlu1 %755  ;;  %v828_v6 = vsel %vm2271_vm7, %v2047_v54, %v800_v45  ;;  %vm2272_vm13 = vmmov %vm2271_vm7 }
  0xfc   : > { %v760_v29 = vsel %vm2261_vm3, %v756_v26, %v1741_v44  ;;  %v845_v44 = vsel %vm2265_vm5, %v811_v11, %v815_v12  ;;  %vm598_vm3 = vmpackc.low %vm597_vm12, %vm596_vm4  ;;  %v831_v50 = vsel %vm2272_vm13, %v2049_v55, %v801_v60  ;;  %vm865_vm4 = vcmask 293888  }
  0xfd   : > { %v2019_v35 = vsel %vm1965_vm2, %v760_v29, 0  ;;  %vm603_vm2 = vcmp.ne.s32.totalorder %v599_v36, %v1724_v17  ;;  %v565_v17 = vpop.permute.xlu0 %564  ;;  %v849_v56 = vsel %vm2269_vm6, %v845_v44, %v819_v51  ;;  %vm2273_vm1 = vmmov %vm2269_vm6  ;;  %v970_v36 = vld [vmem:[%s400_s21] sm:$0x3]  ;;  %vm2278_vm13 = vcmask 908288  }
  0xfe   : > { %v870_v39 = vsel %vm2268_vm11, %v2019_v35, 0  ;;  %vm605_vm5 = vmpackc.low %vm604_vm14, %vm603_vm2  ;;  %v853_v14 = vsel %vm2270_vm9, %v849_v56, %v823_v52  ;;  %v834_v15 = vsel %vm2273_vm1, %v828_v6, %v804_v57  ;;  %v943_v24 = vpop.permute.xlu2 %942  ;;  %vm971_vm12 = vcmp.ne.f32.partialorder %v970_v36, 0.0 }
  0xff   : > { %880 = vmatpush.bf16.msra.mxu0 %v870_v39  ;;  %vm2274_vm10 = vmmov %vm2273_vm1  ;;  %v972_v51 = vsel %vm971_vm12, 1, %v1466_v22 }
 0x100   : > { %v836_v19 = vsel %vm2274_vm10, %v831_v50, %v805_v61  ;;  %vm2275_vm0 = vmmov %vm2270_vm9  ;;  %v973_v45 = vperm.slane %v972_v51, 0  ;;  %vm2280_vm10 = vcmask 1039360  }
 0x101   : > { %vm2276_vm11 = vmmov %vm2275_vm0 }
 0x102   : > { %vm975_vm2 = vcmp.ne.s32.totalorder %v973_v45, 0  ;;  %vm2277_vm7 = vmmov %vm2273_vm1  ;;  %v1183_v45 = vunpack.c.l.bf16 %v1861_v46 }
 0x103   : > { %v572_v62 = vpop.permute.xlu1 %571  ;;  %881 = vmatpush.bf16.msra.mxu0 %v853_v14  ;;  %vm2279_vm1 = vmmov %vm2278_vm13 }
 0x104   : > { %v581_v63 = vsel %vm575_vm8, %v565_v17, %v572_v62  ;;  %v576_v0 = vsel %vm575_vm8, %v572_v62, %v574_v23  ;;  %v974_v23 = vperm.slane %v972_v51, 1 }
 0x105   : > { %v2061_v4 = vsel %vm598_vm3, %v581_v63, 0  ;;  %v2063_v38 = vsel %vm605_vm5, %v576_v0, 0  ;;  %v908_v10 = vpop.permute.xlu0 %907  ;;  %v1469_v63 = vmov 0.0  }
 0x106   : > { %v808_v7 = vrot.slane %v2061_v4, 2  ;;  %v809_v13 = vrot.slane %v2063_v38, 2  ;;  %vm976_vm14 = vcmp.ne.s32.totalorder %v974_v23, 0 }
 0x108   : > { %v839_v20 = vsel %vm2275_vm0, %v834_v15, %v808_v7  ;;  %v842_v32 = vsel %vm2276_vm11, %v836_v19, %v809_v13  ;;  %vm2281_vm0 = vmmov %vm2280_vm10  ;;  %vm2282_vm11 = vcmask 916480  }
 0x109   : > { %882 = vmatpush.bf16.msra.mxu0 %v839_v20  ;;  %896 = vmatpush.bf16.msra.mxu1 %v842_v32  ;;  %vm2283_vm12 = vmmov %vm2282_vm11 }
 0x10b   : > { %v924_v12 = vpop.permute.xlu1 %923 }
 0x10c   : > { %1420 = vmatmul.msk.bf16.vlgmr.msra.gmra.mxu0 %vm865_vm4, %v1419_v41  ;;  %1421 = vmatmul.msk.bf16.vlgmr.msra.gmra.mxu1 %vm865_vm4, %v1419_v41  ;;  %v1085_v41 = vunpack.c.l.bf16 %v1547_v1  ;;  %v920_v1 = vld [vmem:[%s2193_s5 + $0x8] sm:$0xf] }
 0x150   : > { %v963_v39 = vpop.permute.xlu1 %962 }
 0x151   : > { %v965_v56 = vperm.slane %v963_v39, 0 }
 0x189   : > { %v884_v40 = vpop.f32.mrf.mxu0  ;;  %v898_v27 = vpop.f32.mrf.mxu1 }
 0x18a   : > { %v915_v8 = vmul.f32 %v908_v10, %v884_v40  ;;  %v916_v21 = vmul.f32 %v908_v10, %v898_v27 }
 0x18c   : > { %v931_v49 = vadd.f32 %v924_v12, %v915_v8  ;;  %v932_v30 = vadd.f32 %v924_v12, %v916_v21  ;;  %v904_v21 = vld [vmem:[%s2192_s4 + $0x8] sm:$0xf]  ;;  %v1310_v12 = vld [vmem:[%s2197_s9] sm:$0xf] }
 0x18e   : > { %v935_v11 = vmax.f32 %v931_v49, 0.0  ;;  %v936_v31 = vmax.f32 %v932_v30, 0.0  ;;  %v1318_v49 = vld [vmem:[%s2198_s10] sm:$0xf] }
 0x190   : > { %v945_v34 = vmul.f32 %v943_v24, %v935_v11  ;;  %v946_v26 = vmul.f32 %v943_v24, %v936_v31 }
 0x192   : > { %v947_v37 = vrot.slane %v945_v34, 4  ;;  %v953_v59 = vrot.slane %v946_v26, 4 }
 0x194   : > { %v948_v28 = vadd.f32 %v947_v37, %v945_v34  ;;  %v954_v29 = vadd.f32 %v953_v59, %v946_v26 }
 0x196   : > { %v949_v43 = vrot.slane %v948_v28, 2  ;;  %v955_v47 = vrot.slane %v954_v29, 2 }
 0x198   : > { %v950_v44 = vadd.f32 %v949_v43, %v948_v28  ;;  %v956_v52 = vadd.f32 %v955_v47, %v954_v29 }
 0x19a   : > { %v951_v60 = vrot.slane %v950_v44, 1  ;;  %v957_v17 = vrot.slane %v956_v52, 1 }
 0x19c   : > { %v952_v14 = vadd.f32 %v951_v60, %v950_v44  ;;  %v958_v57 = vadd.f32 %v957_v17, %v956_v52  ;;  %v1182_v60 = vunpack.c.l.bf16 %v2019_v35 }
 0x19e   : > { %v966_v61 = vadd.f32 %v965_v56, %v952_v14  ;;  %v967_v62 = vadd.f32 %v965_v56, %v958_v57  ;;  %v1116_v56 = vunpack.c.l.bf16 %v1916_v18  ;;  %v1117_v14 = vunpack.c.l.bf16 %v1777_v33 }
 0x19f   : > { %v1004_v18 = vunpack.c.l.bf16 %v2047_v54 }
 0x1a0   : > { %vm968_vm3 = vcmp.gt.f32.partialorder %v966_v61, 0.0  ;;  %vm969_vm6 = vcmp.gt.f32.partialorder %v967_v62, 0.0 }
 0x1a1   : > { %vm977_vm5 = vmor %vm968_vm3, %vm975_vm2  ;;  %vm2284_vm2 = vcmask 1041408   ;;  %vm2286_vm3 = vcmask 130048  }
 0x1a2   : > { %vm978_vm9 = vmor %vm969_vm6, %vm976_vm14  ;;  %v1422_v22 = vsel %vm977_vm5, 1.0, %v1469_v63  ;;  %vm2288_vm5 = vcmask 924672  }
 0x1a3   : > { %v1423_v0 = vsel %vm978_vm9, 1.0, %v1469_v63  ;;  %vm2285_vm14 = vmmov %vm2284_vm2 }
 0x1a4   : > { %v983_v6 = vpack.c.bf16 %v1423_v0, %v1422_v22  ;;  %vm2287_vm6 = vmmov %vm2286_vm3 }
 0x1a5   : > { %vm2289_vm9 = vmmov %vm2288_vm5 }
 0x1a6   : > { %v985_v50 = vunpack.c.h.b16 %v983_v6  ;;  %v989_v3 = vunpack.c.l.b16 %v983_v6 }
 0x1a8   : > { %v986_v5 = vpack.c.b16 %v985_v50, %v985_v50  ;;  %v990_v7 = vpack.c.b16 %v989_v3, %v989_v3 }
 0x1aa   : > { %v1078_v13 = vpack.i.b16 %v990_v7, %v990_v7  ;;  %v1082_v15 = vpack.i.b16 %v986_v5, %v986_v5  ;;  %1167 = vrot.lane.b32.xlu1 %v990_v7, %s1468_s12  ;;  %1101 = vrot.lane.b32.xlu2 %v990_v7, %s1463_s27 }
 0x1ab   : > { %1103 = vrot.lane.b32.xlu0 %v986_v5, %s1463_s27 }
 0x1ac   : > { %v1080_v19 = vperm.slane %v1078_v13, 0  ;;  %v1084_v20 = vperm.slane %v1082_v15, 0 }
 0x1ae   : > { %v1087_v32 = vunpack.c.l.bf16 %v1084_v20  ;;  %v1086_v10 = vunpack.c.l.bf16 %v1080_v19 }
 0x1b0   : > { %v1090_v40 = vrot.slane %v1087_v32, 4 }
 0x1b2   : > { %v1091_v27 = vsel %vm2277_vm7, %v1086_v10, %v1090_v40  ;;  %1147 = vrot.lane.b32.xlu1 %v986_v5, %s1465_s29  ;;  %1169 = vrot.lane.b32.xlu2 %v986_v5, %s1468_s12  ;;  %v1026_v10 = vunpack.c.l.bf16 %v1986_v42  ;;  %vm2290_vm7 = vmmov %vm2284_vm2 }
 0x1b3   : > { %v1093_v8 = vmul.f32 %v1091_v27, %v1085_v41  ;;  %1145 = vrot.lane.b32.xlu0 %v990_v7, %s1465_s29  ;;  %v1005_v41 = vunpack.c.l.bf16 %v2049_v55 }
 0x1b5   : > { %1095 = vst [vmem:[#allocation1] ss:$2 sm:$0xff] %v1093_v8  ;;  %v1027_v8 = vunpack.c.l.bf16 %v1990_v58 }
 0x1ba   : > { %1011 = vrot.lane.b32.xlu1 %v986_v5, %s1461_s25  ;;  %1123 = vrot.lane.b32.xlu2 %v990_v7, %s1464_s28 }
 0x1bb   : > { %1125 = vrot.lane.b32.xlu0 %v986_v5, %s1464_s28 }
 0x1bc   : > { %v1096_v20 = vld.sshfl [vmem:[#allocation1] sm:$0xff pattern:$0x75316420]  ;;  %v1097_v32 = vld.sshfl [vmem:[#allocation1 + $0x8] sm:$0xff pattern:$0x75316420] }
 0x1c2   : > { %991 = vrot.lane.b32.xlu1 %v990_v7, %s1460_s24  ;;  %1013 = vrot.lane.b32.xlu2 %v990_v7, %s1461_s25 }
 0x1c3   : > { %987 = vrot.lane.b32.xlu0 %v986_v5, %s1460_s24 }
 0x1ca   : > { %1033 = vrot.lane.b32.xlu1 %v986_v5, %s1462_s26  ;;  %1055 = vrot.lane.b32.xlu2 %v986_v5, %s1467_s30 }
 0x1cb   : > { %1057 = vrot.lane.b32.xlu0 %v990_v7, %s1467_s30 }
 0x1d2   : > { %928 = vperm.xlu1 %1450, %v920_v1   ;;  %1035 = vrot.lane.b32.xlu2 %v990_v7, %s1462_s26  ;;  %v1161_v1 = vunpack.c.l.bf16 %v1836_v9 }
 0x1d3   : > { %912 = vperm.xlu0 %1449, %v904_v21  }
 0x1da   : > { %1313 = vperm.xlu2 %1451, %v1310_v12  }
 0x1db   : > { %1321 = vperm.xlu0 %1449, %v1318_v49   ;;  %v1160_v49 = vunpack.c.l.bf16 %v1982_v25 }
 0x204   : > { %v1102_v30 = vpop.permute.xlu2 %1101 }
 0x20c   : > { %v1170_v24 = vpop.permute.xlu2 %1169 }
 0x214   : > { %v2116_v36 = vpop.permute.xlu2 %1123 }
 0x21c   : > { %v1168_v11 = vpop.permute.xlu1 %1167  ;;  %v1014_v15 = vpop.permute.xlu2 %1013 }
 0x21d   : > { %v1171_v31 = vsel %vm2278_vm13, %v1168_v11, %v1170_v24  ;;  %v1174_v34 = vsel %vm2279_vm1, %v1170_v24, %v1168_v11  ;;  %v1104_v26 = vpop.permute.xlu0 %1103  ;;  %v1100_v11 = vpack.c.bf16 %v1097_v32, %v1096_v20  ;;  %vm2291_vm13 = vmmov %vm2284_vm2 }
 0x21e   : > { %v1176_v37 = vpack.i.b16 %v1171_v31, %v1171_v31  ;;  %v1179_v59 = vpack.i.b16 %v1174_v34, %v1174_v34  ;;  %v1105_v28 = vsel %vm2280_vm10, %v1102_v30, %v1104_v26  ;;  %v1108_v29 = vsel %vm2281_vm0, %v1104_v26, %v1102_v30 }
 0x21f   : > { %v1110_v43 = vpack.i.b16 %v1105_v28, %v1105_v28  ;;  %v1113_v47 = vpack.i.b16 %v1108_v29, %v1108_v29  ;;  %vm2294_vm10 = vcmask 1043456   ;;  %vm2295_vm0 = vcmask 1045504  }
 0x220   : > { %v1178_v51 = vperm.slane %v1176_v37, 0  ;;  %v1181_v44 = vperm.slane %v1179_v59, 0 }
 0x221   : > { %v1112_v52 = vperm.slane %v1110_v43, 0  ;;  %v1115_v39 = vperm.slane %v1113_v47, 0 }
 0x222   : > { %v1184_v17 = vunpack.c.l.bf16 %v1178_v51  ;;  %v1185_v23 = vunpack.c.l.bf16 %v1181_v44  ;;  %v1048_v44 = vunpack.c.l.bf16 %v2039_v2 }
 0x223   : > { %v1118_v57 = vunpack.c.l.bf16 %v1112_v52  ;;  %v1119_v61 = vunpack.c.l.bf16 %v1115_v39 }
 0x224   : > { %v1186_v62 = vmul.f32 %v1184_v17, %v1182_v60  ;;  %v1187_v63 = vmul.f32 %v1185_v23, %v1183_v45  ;;  %v1148_v22 = vpop.permute.xlu1 %1147  ;;  %v1049_v60 = vunpack.c.l.bf16 %v2043_v53  ;;  %v1139_v17 = vunpack.c.l.bf16 %v1814_v16 }
 0x225   : > { %v1120_v0 = vmul.f32 %v1118_v57, %v1116_v56  ;;  %v1121_v6 = vmul.f32 %v1119_v61, %v1117_v14  ;;  %v1146_v50 = vpop.permute.xlu0 %1145 }
 0x226   : > { %v1149_v3 = vsel %vm2282_vm11, %v1146_v50, %v1148_v22  ;;  %v1152_v46 = vsel %vm2283_vm12, %v1148_v22, %v1146_v50  ;;  %v1188_v5 = vpack.c.bf16 %v1187_v63, %v1186_v62  ;;  %v1214_v62 = vunpack.c.l.b16 %v1100_v11  ;;  %vm2296_vm11 = vmmov %vm2294_vm10 }
 0x227   : > { %v1122_v35 = vpack.c.bf16 %v1121_v6, %v1120_v0  ;;  %v1154_v7 = vpack.i.b16 %v1149_v3, %v1149_v3  ;;  %v1157_v13 = vpack.i.b16 %v1152_v46, %v1152_v46  ;;  %v1138_v63 = vunpack.c.l.bf16 %v1961_v48  ;;  %vm2297_vm12 = vmmov %vm2295_vm0 }
 0x228   : > { %v1238_v33 = vunpack.c.l.b16 %v1188_v5  ;;  %v1239_v19 = vunpack.c.h.b16 %v1188_v5  ;;  %v1070_v50 = vunpack.c.l.bf16 %v2061_v4  ;;  %v1216_v32 = vpack.c.b16 %v1214_v62, %v1214_v62 }
 0x229   : > { %v1156_v40 = vperm.slane %v1154_v7, 0  ;;  %v1159_v27 = vperm.slane %v1157_v13, 0  ;;  %v1219_v31 = vunpack.c.l.b16 %v1122_v35  ;;  %v1220_v34 = vunpack.c.h.b16 %v1122_v35 }
 0x22a   : > { %v1240_v21 = vpack.c.b16 %v1238_v33, %v1238_v33  ;;  %v1241_v12 = vpack.c.b16 %v1239_v19, %v1239_v19  ;;  %v1215_v13 = vunpack.c.h.b16 %v1100_v11 }
 0x22b   : > { %v1162_v30 = vunpack.c.l.bf16 %v1156_v40  ;;  %v1163_v24 = vunpack.c.l.bf16 %v1159_v27  ;;  %v1221_v14 = vpack.c.b16 %v1219_v31, %v1219_v31  ;;  %v1222_v22 = vpack.c.b16 %v1220_v34, %v1220_v34 }
 0x22c   : > { %v1012_v26 = vpop.permute.xlu1 %1011  ;;  %v1279_v37 = vsel %vm2284_vm2, %v1240_v21, 0  ;;  %v1282_v42 = vsel %vm2285_vm14, %v1241_v12, 0  ;;  %v1217_v31 = vpack.c.b16 %v1215_v13, %v1215_v13  ;;  %vm2299_vm14 = vmmov %vm2294_vm10 }
 0x22d   : > { %v1164_v59 = vmul.f32 %v1162_v30, %v1160_v49  ;;  %v1165_v28 = vmul.f32 %v1163_v24, %v1161_v1  ;;  %v1015_v58 = vsel %vm2286_vm3, %v1014_v15, %v1012_v26  ;;  %v1018_v9 = vsel %vm2287_vm6, %v1012_v26, %v1014_v15  ;;  %v1126_v29 = vpop.permute.xlu0 %1125  ;;  %1289 = vmatpush.bf16.msra.mxu2 %v1279_v37  ;;  %vm2300_vm3 = vmmov %vm2294_vm10 }
 0x22e   : > { %v1019_v43 = vpack.i.b16 %v1018_v9, %v1018_v9  ;;  %v1023_v25 = vpack.i.b16 %v1015_v58, %v1015_v58  ;;  %v1127_v47 = vsel %vm2288_vm5, %v2116_v36, %v1126_v29  ;;  %v1130_v51 = vsel %vm2289_vm9, %v1126_v29, %v2116_v36  ;;  %1302 = vmatpush.bf16.msra.mxu3 %v1282_v42  ;;  %v1056_v36 = vpop.permute.xlu2 %1055  ;;  %vm2301_vm6 = vmmov %vm2295_vm0 }
 0x22f   : > { %v1166_v52 = vpack.c.bf16 %v1165_v28, %v1164_v59  ;;  %v1132_v39 = vpack.i.b16 %v1127_v47, %v1127_v47  ;;  %v1135_v45 = vpack.i.b16 %v1130_v51, %v1130_v51  ;;  %v1223_v40 = vrot.slane %v1221_v14, 6  ;;  %vm2302_vm5 = vmmov %vm2295_vm0 }
 0x230   : > { %v1021_v23 = vperm.slane %v1019_v43, 0  ;;  %v1025_v56 = vperm.slane %v1023_v25, 0  ;;  %v1224_v21 = vrot.slane %v1222_v22, 6  ;;  %v1071_v59 = vunpack.c.l.bf16 %v2063_v38  ;;  %vm2304_vm9 = vmmov %vm2300_vm3 }
 0x231   : > { %v1134_v57 = vperm.slane %v1132_v39, 0  ;;  %v1137_v61 = vperm.slane %v1135_v45, 0  ;;  %v1231_v5 = vunpack.c.l.b16 %v1166_v52  ;;  %v1232_v15 = vunpack.c.h.b16 %v1166_v52 }
 0x232   : > { %v1028_v0 = vunpack.c.l.bf16 %v1021_v23  ;;  %v1029_v6 = vunpack.c.l.bf16 %v1025_v56  ;;  %v1260_v58 = vsel %vm2290_vm7, %v1216_v32, %v1223_v40  ;;  %v1263_v9 = vsel %vm2291_vm13, %v1217_v31, %v1224_v21 }
 0x233   : > { %v1140_v3 = vunpack.c.l.bf16 %v1134_v57  ;;  %v1141_v46 = vunpack.c.l.bf16 %v1137_v61  ;;  %v1233_v24 = vpack.c.b16 %v1231_v5, %v1231_v5  ;;  %v1234_v11 = vpack.c.b16 %v1232_v15, %v1232_v15 }
 0x234   : > { %v1030_v35 = vmul.f32 %v1028_v0, %v1026_v10  ;;  %v1031_v7 = vmul.f32 %v1029_v6, %v1027_v8  ;;  %v992_v16 = vpop.permute.xlu1 %991 }
 0x235   : > { %v1142_v33 = vmul.f32 %v1140_v3, %v1138_v63  ;;  %v1143_v19 = vmul.f32 %v1141_v46, %v1139_v17  ;;  %v988_v20 = vpop.permute.xlu0 %987  ;;  %v1235_v47 = vrot.slane %v1233_v24, 2  ;;  %v1236_v17 = vrot.slane %v1234_v11, 2 }
 0x236   : > { %v1032_v48 = vpack.c.bf16 %v1031_v7, %v1030_v35  ;;  %v993_v27 = vsel %vm432_vm15, %v992_v16, %v988_v20  ;;  %v996_v1 = vsel %vm432_vm15, %v988_v20, %v992_v16  ;;  %v1036_v52 = vpop.permute.xlu2 %1035  ;;  %vm2292_vm15 = vcmask 121856  }
 0x237   : > { %v1144_v12 = vpack.c.bf16 %v1143_v19, %v1142_v33  ;;  %v997_v49 = vpack.i.b16 %v996_v1, %v996_v1  ;;  %v1001_v30 = vpack.i.b16 %v993_v27, %v993_v27  ;;  %vm2293_vm1 = vmmov %vm2292_vm15 }
 0x238   : > { %v1195_v10 = vunpack.c.l.b16 %v1032_v48  ;;  %v1196_v8 = vunpack.c.h.b16 %v1032_v48 }
 0x239   : > { %v999_v34 = vperm.slane %v997_v49, 0  ;;  %v1003_v26 = vperm.slane %v1001_v30, 0  ;;  %v1226_v37 = vunpack.c.l.b16 %v1144_v12  ;;  %v1227_v42 = vunpack.c.h.b16 %v1144_v12 }
 0x23a   : > { %v1197_v28 = vpack.c.b16 %v1195_v10, %v1195_v10  ;;  %v1198_v51 = vpack.c.b16 %v1196_v8, %v1196_v8 }
 0x23b   : > { %v1006_v29 = vunpack.c.l.bf16 %v999_v34  ;;  %v1007_v43 = vunpack.c.l.bf16 %v1003_v26  ;;  %v1228_v25 = vpack.c.b16 %v1226_v37, %v1226_v37  ;;  %v1229_v45 = vpack.c.b16 %v1227_v42, %v1227_v42 }
 0x23c   : > { %v1034_v39 = vpop.permute.xlu1 %1033  ;;  %v1199_v23 = vrot.slane %v1197_v28, 6  ;;  %v1200_v19 = vrot.slane %v1198_v51, 6  ;;  %v1274_v28 = vld [vmem:[%s2196_s8] sm:$0x3] }
 0x23d   : > { %v1008_v56 = vmul.f32 %v1006_v29, %v1004_v18  ;;  %v1009_v38 = vmul.f32 %v1007_v43, %v1005_v41  ;;  %v1037_v14 = vsel %vm2292_vm15, %v1036_v52, %v1034_v39  ;;  %v1040_v57 = vsel %vm2293_vm1, %v1034_v39, %v1036_v52  ;;  %v1058_v61 = vpop.permute.xlu0 %1057  ;;  %v900_v29 = vpop.f32.mrf.mxu1 }
 0x23e   : > { %v1041_v62 = vpack.i.b16 %v1040_v57, %v1040_v57  ;;  %v1045_v63 = vpack.i.b16 %v1037_v14, %v1037_v14  ;;  %v1059_v22 = vsel %vm575_vm8, %v1058_v61, %v1056_v36  ;;  %v1062_v0 = vsel %vm575_vm8, %v1056_v36, %v1058_v61  ;;  %vm2298_vm8 = vmmov %vm2284_vm2  ;;  %v1314_v39 = vpop.permute.xlu2 %1313 }
 0x23f   : > { %v1010_v6 = vpack.c.bf16 %v1009_v38, %v1008_v56  ;;  %v1063_v3 = vpack.i.b16 %v1062_v0, %v1062_v0  ;;  %v1067_v46 = vpack.i.b16 %v1059_v22, %v1059_v22  ;;  %v1265_v54 = vsel %vm2294_vm10, %v1260_v58, %v1228_v25 }
 0x240   : > { %v1043_v18 = vperm.slane %v1041_v62, 0  ;;  %v1047_v5 = vperm.slane %v1045_v63, 0  ;;  %v1269_v55 = vsel %vm2295_vm0, %v1265_v54, %v1235_v47  ;;  %v1267_v41 = vsel %vm2296_vm11, %v1263_v9, %v1229_v45  ;;  %v886_v9 = vpop.f32.mrf.mxu0 }
 0x241   : > { %v1190_v35 = vunpack.c.l.b16 %v1010_v6  ;;  %v1191_v7 = vunpack.c.h.b16 %v1010_v6  ;;  %v1065_v16 = vperm.slane %v1063_v3, 0  ;;  %v1069_v13 = vperm.slane %v1067_v46, 0  ;;  %1290 = vmatpush.bf16.msra.mxu2 %v1269_v55 }
 0x242   : > { %v1050_v15 = vunpack.c.l.bf16 %v1043_v18  ;;  %v1051_v33 = vunpack.c.l.bf16 %v1047_v5  ;;  %v1272_v36 = vsel %vm2297_vm12, %v1267_v41, %v1236_v17 }
 0x243   : > { %v1072_v20 = vunpack.c.l.bf16 %v1065_v16  ;;  %v1073_v32 = vunpack.c.l.bf16 %v1069_v13  ;;  %1303 = vmatpush.bf16.msra.mxu3 %v1272_v36  ;;  %v1192_v40 = vpack.c.b16 %v1190_v35, %v1190_v35  ;;  %v1193_v48 = vpack.c.b16 %v1191_v7, %v1191_v7 }
 0x244   : > { %v1052_v27 = vmul.f32 %v1050_v15, %v1048_v44  ;;  %v1053_v1 = vmul.f32 %v1051_v33, %v1049_v60  ;;  %v929_v47 = vpop.permute.xlu1 %928 }
 0x245   : > { %v1074_v21 = vmul.f32 %v1072_v20, %v1070_v50  ;;  %v1075_v12 = vmul.f32 %v1073_v32, %v1071_v59  ;;  %v1244_v49 = vsel %vm2298_vm8, %v1192_v40, %v1199_v23  ;;  %v1247_v30 = vsel %vm2284_vm2, %v1193_v48, %v1200_v19  ;;  %v913_v58 = vpop.permute.xlu0 %912 }
 0x246   : > { %v1054_v24 = vpack.c.bf16 %v1053_v1, %v1052_v27  ;;  %v917_v43 = vmul.f32 %v913_v58, %v886_v9  ;;  %v918_v25 = vmul.f32 %v913_v58, %v900_v29 }
 0x247   : > { %v1076_v10 = vpack.c.bf16 %v1075_v12, %v1074_v21 }
 0x248   : > { %v1202_v8 = vunpack.c.l.b16 %v1054_v24  ;;  %v1203_v31 = vunpack.c.h.b16 %v1054_v24  ;;  %v933_v51 = vadd.f32 %v929_v47, %v917_v43  ;;  %v934_v52 = vadd.f32 %v929_v47, %v918_v25 }
 0x249   : > { %v1207_v11 = vunpack.c.l.b16 %v1076_v10  ;;  %v1208_v34 = vunpack.c.h.b16 %v1076_v10 }
 0x24a   : > { %v1204_v26 = vpack.c.b16 %v1202_v8, %v1202_v8  ;;  %v1205_v2 = vpack.c.b16 %v1203_v31, %v1203_v31  ;;  %v937_v23 = vmax.f32 %v933_v51, 0.0  ;;  %v938_v56 = vmax.f32 %v934_v52, 0.0 }
 0x24b   : > { %v1209_v44 = vpack.c.b16 %v1207_v11, %v1207_v11  ;;  %v1210_v37 = vpack.c.b16 %v1208_v34, %v1208_v34 }
 0x24c   : > { %v1249_v53 = vsel %vm2299_vm14, %v1244_v49, %v1204_v26  ;;  %v1251_v4 = vsel %vm2300_vm3, %v1247_v30, %v1205_v2  ;;  %v1330_v63 = vrot.slane %v937_v23, 4  ;;  %v1331_v22 = vrot.slane %v938_v56, 4 }
 0x24d   : > { %v1211_v60 = vrot.slane %v1209_v44, 2  ;;  %v1212_v50 = vrot.slane %v1210_v37, 2  ;;  %v1322_v57 = vpop.permute.xlu0 %1321 }
 0x24f   : > { %v1253_v42 = vsel %vm2301_vm6, %v1249_v53, %v1211_v60  ;;  %v1256_v59 = vsel %vm2302_vm5, %v1251_v4, %v1212_v50 }
 0x250   : > { %1291 = vmatpush.bf16.msra.mxu2 %v1253_v42  ;;  %1304 = vmatpush.bf16.msra.mxu3 %v1256_v59 }
 0x253   : > { %1424 = vmatmul.msk.bf16.vlgmr.msra.gmra.mxu2 %vm865_vm4, %v1274_v28  ;;  %1425 = vmatmul.msk.bf16.vlgmr.msra.gmra.mxu3 %vm865_vm4, %v1274_v28  ;;  %vm2303_vm4 = vmmov %vm2300_vm3 }
 0x2d6   : > { %v1293_v45 = vpop.f32.mrf.mxu2  ;;  %v1306_v17 = vpop.f32.mrf.mxu3 }
 0x2d7   : > { %v1316_v38 = vmul.f32 %v1314_v39, %v1293_v45  ;;  %v1317_v14 = vmul.f32 %v1314_v39, %v1306_v17 }
 0x2d9   : > { %v1324_v61 = vadd.f32 %v1322_v57, %v1316_v38  ;;  %v1325_v62 = vadd.f32 %v1322_v57, %v1317_v14 }
 0x2db   : > { %v1326_v0 = vmax.f32 %v1324_v61, 0.0  ;;  %v1327_v6 = vmax.f32 %v1325_v62, 0.0 }
 0x2dd   : > { %v1334_v3 = vsel %vm2303_vm4, %v1326_v0, %v1330_v63  ;;  %v1335_v46 = vsel %vm2304_vm9, %v1327_v6, %v1331_v22 }
 0x2de   : > { %1336 = vst [vmem:[%s405_s16] sm:$0xff] %v1334_v3  ;;  %v1295_v54 = vpop.f32.mrf.mxu2  ;;  %v1308_v18 = vpop.f32.mrf.mxu3 }
 0x2df   : > { %1337 = vst [vmem:[%s405_s16 + $0x8] sm:$0xff] %v1335_v46 }
 0x2e0 PF: > { %s23_s19 = sadd.s32 1, %s1458_s19  }
 0x2e1   : > { %p20_p4 = scmp.ge.s32.totalorder %s23_s19, 4  }
 0x2e3   :  { %22 = sbr.rel (!%p20_p4) target bundleno = 3 (0x3), region = 98 }

</bundles_post_ra>
